<compile_context>
chip_gen: v7x
topology: tpu7x:2x2x1
jax: 0.10.0
libtpu: 0.0.40
codegen_flags: <defaults>
</compile_context>

<pallas_src>
import functools
import math

import jax
import jax.numpy as jnp
from jax.experimental import pallas as pl
from jax.experimental.pallas import tpu as pltpu


def swin_block_kernel(x_ref, gamma_ref, beta_ref, wqkv_ref, bqkv_ref,
                      wo_ref, bo_ref, w1_ref, b1_ref, w2_ref, b2_ref,
                      o_ref, *, batch, seq, num_heads):
    f32 = jnp.float32
    bf16 = jnp.bfloat16

    x = x_ref[...]                                   # (C, T) fp32, T = B*S
    C, T = x.shape
    B, S, H = batch, seq, num_heads
    dh = C // H

    # ---- LayerNorm over channels (sublane-axis reduce), eps = 1e-5 ----
    mean = jnp.mean(x, axis=0, keepdims=True)                       # (1, T)
    var = jnp.mean(jnp.square(x - mean), axis=0, keepdims=True)
    xn = (x - mean) * jax.lax.rsqrt(var + 1e-5)
    xn = xn * gamma_ref[...] + beta_ref[...]                        # (C,1) bcast

    # ---- fused QKV projection: (3C, C) @ (C, T) -> (3C, T), fp32 bias ----
    qkv = jnp.dot(wqkv_ref[...], xn.astype(bf16),
                  preferred_element_type=f32) + bqkv_ref[...]       # (3C, T)

    q_ct = qkv[0 * C:1 * C]            # (C, T), 1/sqrt(dh) folded into Wq/bq
    k_ct = qkv[1 * C:2 * C]
    v_ct = qkv[2 * C:3 * C]

    # Head split (C -> H, dh) is a pure sublane split; K/V stay channel-major.
    k_hdT = k_ct.reshape(H, dh, T)                                  # (H, dh, T)
    v_hdT = v_ct.reshape(H, dh, T)
    # Only Q gets a minor-two tile transpose (canonical MXU lhs layout).
    q_hTd = jnp.transpose(q_ct.reshape(H, dh, T), (0, 2, 1))        # (H, T, dh)

    # ---- attention per batch (static loop), heads batched in the einsums ----
    o_parts = []
    for b in range(B):
        lo, hi = b * S, (b + 1) * S
        qb = q_hTd[:, lo:hi, :].astype(bf16)                        # (H, S, dh)
        kb = k_hdT[:, :, lo:hi].astype(bf16)                        # (H, dh, S)
        vb = v_hdT[:, :, lo:hi].astype(bf16)                        # (H, dh, S)

        s_hqk = jnp.einsum("hqd,hdk->hqk", qb, kb,
                           preferred_element_type=f32)              # (H, S, S)
        m = jnp.max(s_hqk, axis=-1, keepdims=True)
        e = jnp.exp(s_hqk - m)
        p = (e * pl.reciprocal(jnp.sum(e, axis=-1, keepdims=True),
                               approx=True)).astype(bf16)
        # PV directly in channel-major: output (H, dh, S), M = dh per slice.
        ob = jnp.einsum("hdk,hqk->hdq", vb, p,
                        preferred_element_type=f32)                 # (H, dh, S)
        o_parts.append(ob.reshape(C, S))           # heads stack along sublanes

    o_ct = jnp.concatenate(o_parts, axis=-1).astype(bf16)           # (C, T)

    # ---- output projection: single (C, C) @ (C, T) dot + fp32 bias ----
    attn = jnp.dot(wo_ref[...], o_ct, preferred_element_type=f32) + bo_ref[...]

    x1 = x + attn                                                   # (C, T) fp32

    # ---- MLP (channel-major): Linear -> GELU(tanh) -> Linear + residual ----
    h1 = jnp.dot(w1_ref[...], x1.astype(bf16),
                 preferred_element_type=f32) + b1_ref[...]          # (4C, T)
    h1 = jax.nn.gelu(h1, approximate=True)
    mlp = jnp.dot(w2_ref[...], h1.astype(bf16),
                  preferred_element_type=f32) + b2_ref[...]         # (C, T)

    o_ref[...] = x1 + mlp                                           # lane-dense


def prepare_params(params, num_heads):
    """Raw PyTorch-shaped params -> channel-major kernel layouts."""
    gamma, beta, wqkv, bqkv, wo, bo, w1, b1, w2, b2 = params
    C = gamma.shape[0]
    dh = C // num_heads
    scale = 1.0 / math.sqrt(dh)

    # Fold the 1/sqrt(head_dim) scale into the Q rows of the fused QKV weight.
    scale_vec = jnp.concatenate([jnp.full((C,), scale, jnp.float32),
                                 jnp.ones((2 * C,), jnp.float32)])
    wqkv_s = (wqkv * scale_vec[:, None]).astype(jnp.bfloat16)       # (3C, C)
    bqkv_s = (bqkv * scale_vec).reshape(3 * C, 1)                   # fp32

    # Channel-major math uses the torch (out, in) weights directly as LHS.
    return (gamma.reshape(C, 1), beta.reshape(C, 1),
            wqkv_s, bqkv_s,
            wo.astype(jnp.bfloat16), bo.reshape(C, 1),
            w1.astype(jnp.bfloat16), b1.reshape(4 * C, 1),
            w2.astype(jnp.bfloat16), b2.reshape(C, 1))


def _full_block(a):
    nd = a.ndim
    return pl.BlockSpec(a.shape, lambda *_: (0,) * nd)


def swin_transformer_block(x_nchw, params, num_heads):
    b, c, h, w = x_nchw.shape
    S = h * w
    # NCHW is already channel-major per batch; just merge batch into T.
    x_ct = jnp.transpose(x_nchw.reshape(b, c, S), (1, 0, 2)).reshape(c, b * S)
    x_ct = x_ct.astype(jnp.float32)

    prep = prepare_params(params, num_heads)

    out_ct = pl.pallas_call(
        functools.partial(swin_block_kernel, batch=b, seq=S,
                          num_heads=num_heads),
        out_shape=jax.ShapeDtypeStruct((c, b * S), jnp.float32),
        in_specs=[_full_block(x_ct)] + [_full_block(a) for a in prep],
        out_specs=pl.BlockSpec((c, b * S), lambda *_: (0, 0)),
        compiler_params=pltpu.CompilerParams(vmem_limit_bytes=32 * 1024 * 1024),
    )(x_ct, *prep)

    # (C, B*S) -> (B, C, S) -> NCHW
    return jnp.transpose(out_ct.reshape(c, b, S), (1, 0, 2)).reshape(b, c, h, w)


def make_params(key, dim):
    """Deterministic synthetic parameters in raw PyTorch module shapes."""
    ks = jax.random.split(key, 8)
    s = 0.1
    gamma = jnp.ones((dim,), jnp.float32)
    beta = jnp.zeros((dim,), jnp.float32)
    wqkv = jax.random.normal(ks[0], (3 * dim, dim), jnp.float32) * s   # in_proj_weight
    bqkv = jax.random.normal(ks[1], (3 * dim,), jnp.float32) * s       # in_proj_bias
    wo = jax.random.normal(ks[2], (dim, dim), jnp.float32) * s         # out_proj.weight
    bo = jax.random.normal(ks[3], (dim,), jnp.float32) * s
    w1 = jax.random.normal(ks[4], (4 * dim, dim), jnp.float32) * s
    b1 = jax.random.normal(ks[5], (4 * dim,), jnp.float32) * s
    w2 = jax.random.normal(ks[6], (dim, 4 * dim), jnp.float32) * s
    b2 = jax.random.normal(ks[7], (dim,), jnp.float32) * s
    return (gamma, beta, wqkv, bqkv, wo, bo, w1, b1, w2, b2)


def reference_block(x_nchw, params, num_heads):
    """Pure-JAX fp32 reference mirroring the PyTorch forward (exact GELU)."""
    gamma, beta, wqkv, bqkv, wo, bo, w1, b1, w2, b2 = params
    b, c, h, w = x_nchw.shape
    S = h * w
    dh = c // num_heads
    x = jnp.transpose(x_nchw.reshape(b, c, S), (0, 2, 1))
    mean = jnp.mean(x, -1, keepdims=True)
    var = jnp.mean((x - mean) ** 2, -1, keepdims=True)
    xn = (x - mean) / jnp.sqrt(var + 1e-5) * gamma + beta
    qkv = xn @ wqkv.T + bqkv
    q, k, v = qkv[..., :c], qkv[..., c:2 * c], qkv[..., 2 * c:]

    def split(t):
        return jnp.transpose(t.reshape(b, S, num_heads, dh), (0, 2, 1, 3))

    qh, kh, vh = split(q), split(k), split(v)
    sc = jnp.einsum("bhqd,bhkd->bhqk", qh, kh) / math.sqrt(dh)
    p = jax.nn.softmax(sc, axis=-1)
    o = jnp.einsum("bhqk,bhkd->bhqd", p, vh)
    o = jnp.transpose(o, (0, 2, 1, 3)).reshape(b, S, c)
    attn_out = o @ wo.T + bo
    x1 = x + attn_out
    mlp = jax.nn.gelu(x1 @ w1.T + b1, approximate=False) @ w2.T + b2
    out = x1 + mlp
    return jnp.transpose(out, (0, 2, 1)).reshape(b, c, h, w)


if __name__ == "__main__":
    B, C, H, W = 2, 32, 8, 8          # dim=32, spatial 8x8 -> 64 tokens, 4 heads
    NUM_HEADS = 4
    key = jax.random.PRNGKey(0)
    kx, kp = jax.random.split(key)
    x = jax.random.normal(kx, (B, C, H, W), jnp.float32)
    params = make_params(kp, C)

    out = jax.block_until_ready(swin_transformer_block(x, params, NUM_HEADS))
    ref = reference_block(x, params, NUM_HEADS)

    assert out.shape == (B, C, H, W)
    # bf16 matmul operands + approx reciprocal + tanh-GELU -> relaxed tolerance
    assert jnp.allclose(out, ref, atol=5e-2, rtol=5e-2)
    print("KERNEL_OK")
</pallas_src>

<mosaic_0001>
module attributes {stable_mosaic.version = 11 : i64} {
  func.func @swin_block_kernel(%arg0: memref<32x128xf32, #tpu.memory_space<vmem>>, %arg1: memref<32x1xf32, #tpu.memory_space<vmem>>, %arg2: memref<32x1xf32, #tpu.memory_space<vmem>>, %arg3: memref<96x32xbf16, #tpu.memory_space<vmem>>, %arg4: memref<96x1xf32, #tpu.memory_space<vmem>>, %arg5: memref<32x32xbf16, #tpu.memory_space<vmem>>, %arg6: memref<32x1xf32, #tpu.memory_space<vmem>>, %arg7: memref<128x32xbf16, #tpu.memory_space<vmem>>, %arg8: memref<128x1xf32, #tpu.memory_space<vmem>>, %arg9: memref<32x128xbf16, #tpu.memory_space<vmem>>, %arg10: memref<32x1xf32, #tpu.memory_space<vmem>>, %arg11: memref<32x128xf32, #tpu.memory_space<vmem>>) attributes {dimension_semantics = [], scalar_prefetch = 0 : i64, scratch_operands = 0 : i64, tpu.core_type = #tpu.core_type<tc>} {
    %c0 = arith.constant 0 : index
    %c0_0 = arith.constant 0 : index
    %0 = vector.load %arg0[%c0, %c0_0] : memref<32x128xf32, #tpu.memory_space<vmem>>, vector<32x128xf32>
    %cst = arith.constant dense<0.000000e+00> : vector<128xf32>
    %1 = vector.multi_reduction <add>, %0, %cst [0] : vector<32x128xf32> to vector<128xf32>
    %2 = vector.shape_cast %1 : vector<128xf32> to vector<1x128xf32>
    %cst_1 = arith.constant 3.200000e+01 : f32
    %3 = vector.broadcast %cst_1 : f32 to vector<1x128xf32>
    %4 = arith.divf %2, %3 : vector<1x128xf32>
    %5 = vector.broadcast %4 : vector<1x128xf32> to vector<32x128xf32>
    %6 = arith.subf %0, %5 : vector<32x128xf32>
    %7 = arith.mulf %6, %6 : vector<32x128xf32>
    %cst_2 = arith.constant dense<0.000000e+00> : vector<128xf32>
    %8 = vector.multi_reduction <add>, %7, %cst_2 [0] : vector<32x128xf32> to vector<128xf32>
    %9 = vector.shape_cast %8 : vector<128xf32> to vector<1x128xf32>
    %cst_3 = arith.constant 3.200000e+01 : f32
    %10 = vector.broadcast %cst_3 : f32 to vector<1x128xf32>
    %11 = arith.divf %9, %10 : vector<1x128xf32>
    %12 = vector.broadcast %4 : vector<1x128xf32> to vector<32x128xf32>
    %13 = arith.subf %0, %12 : vector<32x128xf32>
    %cst_4 = arith.constant 9.99999974E-6 : f32
    %14 = vector.broadcast %cst_4 : f32 to vector<1x128xf32>
    %15 = arith.addf %11, %14 : vector<1x128xf32>
    %16 = math.rsqrt %15 : vector<1x128xf32>
    %17 = vector.broadcast %16 : vector<1x128xf32> to vector<32x128xf32>
    %18 = arith.mulf %13, %17 : vector<32x128xf32>
    %c0_5 = arith.constant 0 : index
    %c0_6 = arith.constant 0 : index
    %19 = vector.load %arg1[%c0_5, %c0_6] : memref<32x1xf32, #tpu.memory_space<vmem>>, vector<32x1xf32>
    %20 = vector.broadcast %19 : vector<32x1xf32> to vector<32x128xf32>
    %21 = arith.mulf %18, %20 : vector<32x128xf32>
    %c0_7 = arith.constant 0 : index
    %c0_8 = arith.constant 0 : index
    %22 = vector.load %arg2[%c0_7, %c0_8] : memref<32x1xf32, #tpu.memory_space<vmem>>, vector<32x1xf32>
    %23 = vector.broadcast %22 : vector<32x1xf32> to vector<32x128xf32>
    %24 = arith.addf %21, %23 : vector<32x128xf32>
    %c0_9 = arith.constant 0 : index
    %c0_10 = arith.constant 0 : index
    %25 = vector.load %arg3[%c0_9, %c0_10] : memref<96x32xbf16, #tpu.memory_space<vmem>>, vector<96x32xbf16>
    %26 = arith.truncf %24 : vector<32x128xf32> to vector<32x128xbf16>
    %cst_11 = arith.constant dense<0.000000e+00> : vector<96x128xf32>
    %27 = tpu.matmul %25, %26, %cst_11 {dimension_numbers = #tpu.dot_dimension_numbers<[1], [0], [0], [1], [0, 0, 1, 1], [], []>} : vector<96x32xbf16>, vector<32x128xbf16>, vector<96x128xf32> -> vector<96x128xf32>
    %c0_12 = arith.constant 0 : index
    %c0_13 = arith.constant 0 : index
    %28 = vector.load %arg4[%c0_12, %c0_13] : memref<96x1xf32, #tpu.memory_space<vmem>>, vector<96x1xf32>
    %29 = vector.broadcast %28 : vector<96x1xf32> to vector<96x128xf32>
    %30 = arith.addf %27, %29 : vector<96x128xf32>
    %31 = vector.extract_strided_slice %30 {offsets = [0, 0], sizes = [32, 128], strides = [1, 1]} : vector<96x128xf32> to vector<32x128xf32>
    %32 = vector.extract_strided_slice %30 {offsets = [32, 0], sizes = [32, 128], strides = [1, 1]} : vector<96x128xf32> to vector<32x128xf32>
    %33 = vector.extract_strided_slice %30 {offsets = [64, 0], sizes = [32, 128], strides = [1, 1]} : vector<96x128xf32> to vector<32x128xf32>
    %34 = vector.shape_cast %32 : vector<32x128xf32> to vector<4x8x128xf32>
    %35 = vector.shape_cast %33 : vector<32x128xf32> to vector<4x8x128xf32>
    %36 = vector.shape_cast %31 : vector<32x128xf32> to vector<4x8x128xf32>
    %37 = tpu.transpose %36, [0, 2, 1] : vector<4x8x128xf32> -> vector<4x128x8xf32>
    %38 = vector.extract_strided_slice %37 {offsets = [0, 0, 0], sizes = [4, 64, 8], strides = [1, 1, 1]} : vector<4x128x8xf32> to vector<4x64x8xf32>
    %39 = arith.truncf %38 : vector<4x64x8xf32> to vector<4x64x8xbf16>
    %40 = vector.extract_strided_slice %34 {offsets = [0, 0, 0], sizes = [4, 8, 64], strides = [1, 1, 1]} : vector<4x8x128xf32> to vector<4x8x64xf32>
    %41 = arith.truncf %40 : vector<4x8x64xf32> to vector<4x8x64xbf16>
    %42 = vector.extract_strided_slice %35 {offsets = [0, 0, 0], sizes = [4, 8, 64], strides = [1, 1, 1]} : vector<4x8x128xf32> to vector<4x8x64xf32>
    %43 = arith.truncf %42 : vector<4x8x64xf32> to vector<4x8x64xbf16>
    "tpu.trace_start"() <{level = 10 : i32, message = "hqd,hdk->hqk"}> : () -> ()
    %cst_14 = arith.constant dense<0.000000e+00> : vector<4x64x64xf32>
    %44 = tpu.matmul %39, %41, %cst_14 {dimension_numbers = #tpu.dot_dimension_numbers<[2], [1], [1], [2], [0, 0, 0, 1, 1, 2], [0], [0]>} : vector<4x64x8xbf16>, vector<4x8x64xbf16>, vector<4x64x64xf32> -> vector<4x64x64xf32>
    "tpu.trace_stop"() : () -> ()
    %cst_15 = arith.constant dense<0xFF800000> : vector<4x64xf32>
    %45 = vector.multi_reduction <maximumf>, %44, %cst_15 [2] : vector<4x64x64xf32> to vector<4x64xf32>
    %46 = vector.shape_cast %45 : vector<4x64xf32> to vector<4x64x1xf32>
    %47 = vector.broadcast %46 : vector<4x64x1xf32> to vector<4x64x64xf32>
    %48 = arith.subf %44, %47 : vector<4x64x64xf32>
    %49 = math.exp %48 : vector<4x64x64xf32>
    %cst_16 = arith.constant dense<0.000000e+00> : vector<4x64xf32>
    %50 = vector.multi_reduction <add>, %49, %cst_16 [2] : vector<4x64x64xf32> to vector<4x64xf32>
    %51 = vector.shape_cast %50 : vector<4x64xf32> to vector<4x64x1xf32>
    %52 = tpu.reciprocal %51 {approx = true} : vector<4x64x1xf32> -> vector<4x64x1xf32>
    %53 = vector.broadcast %52 : vector<4x64x1xf32> to vector<4x64x64xf32>
    %54 = arith.mulf %49, %53 : vector<4x64x64xf32>
    %55 = arith.truncf %54 : vector<4x64x64xf32> to vector<4x64x64xbf16>
    "tpu.trace_start"() <{level = 10 : i32, message = "hdk,hqk->hdq"}> : () -> ()
    %cst_17 = arith.constant dense<0.000000e+00> : vector<4x8x64xf32>
    %56 = tpu.matmul %43, %55, %cst_17 {dimension_numbers = #tpu.dot_dimension_numbers<[2], [2], [1], [1], [0, 0, 0, 1, 1, 1], [0], [0]>} : vector<4x8x64xbf16>, vector<4x64x64xbf16>, vector<4x8x64xf32> -> vector<4x8x64xf32>
    "tpu.trace_stop"() : () -> ()
    %57 = vector.shape_cast %56 : vector<4x8x64xf32> to vector<32x64xf32>
    %58 = vector.extract_strided_slice %37 {offsets = [0, 64, 0], sizes = [4, 64, 8], strides = [1, 1, 1]} : vector<4x128x8xf32> to vector<4x64x8xf32>
    %59 = arith.truncf %58 : vector<4x64x8xf32> to vector<4x64x8xbf16>
    %60 = vector.extract_strided_slice %34 {offsets = [0, 0, 64], sizes = [4, 8, 64], strides = [1, 1, 1]} : vector<4x8x128xf32> to vector<4x8x64xf32>
    %61 = arith.truncf %60 : vector<4x8x64xf32> to vector<4x8x64xbf16>
    %62 = vector.extract_strided_slice %35 {offsets = [0, 0, 64], sizes = [4, 8, 64], strides = [1, 1, 1]} : vector<4x8x128xf32> to vector<4x8x64xf32>
    %63 = arith.truncf %62 : vector<4x8x64xf32> to vector<4x8x64xbf16>
    "tpu.trace_start"() <{level = 10 : i32, message = "hqd,hdk->hqk"}> : () -> ()
    %cst_18 = arith.constant dense<0.000000e+00> : vector<4x64x64xf32>
    %64 = tpu.matmul %59, %61, %cst_18 {dimension_numbers = #tpu.dot_dimension_numbers<[2], [1], [1], [2], [0, 0, 0, 1, 1, 2], [0], [0]>} : vector<4x64x8xbf16>, vector<4x8x64xbf16>, vector<4x64x64xf32> -> vector<4x64x64xf32>
    "tpu.trace_stop"() : () -> ()
    %cst_19 = arith.constant dense<0xFF800000> : vector<4x64xf32>
    %65 = vector.multi_reduction <maximumf>, %64, %cst_19 [2] : vector<4x64x64xf32> to vector<4x64xf32>
    %66 = vector.shape_cast %65 : vector<4x64xf32> to vector<4x64x1xf32>
    %67 = vector.broadcast %66 : vector<4x64x1xf32> to vector<4x64x64xf32>
    %68 = arith.subf %64, %67 : vector<4x64x64xf32>
    %69 = math.exp %68 : vector<4x64x64xf32>
    %cst_20 = arith.constant dense<0.000000e+00> : vector<4x64xf32>
    %70 = vector.multi_reduction <add>, %69, %cst_20 [2] : vector<4x64x64xf32> to vector<4x64xf32>
    %71 = vector.shape_cast %70 : vector<4x64xf32> to vector<4x64x1xf32>
    %72 = tpu.reciprocal %71 {approx = true} : vector<4x64x1xf32> -> vector<4x64x1xf32>
    %73 = vector.broadcast %72 : vector<4x64x1xf32> to vector<4x64x64xf32>
    %74 = arith.mulf %69, %73 : vector<4x64x64xf32>
    %75 = arith.truncf %74 : vector<4x64x64xf32> to vector<4x64x64xbf16>
    "tpu.trace_start"() <{level = 10 : i32, message = "hdk,hqk->hdq"}> : () -> ()
    %cst_21 = arith.constant dense<0.000000e+00> : vector<4x8x64xf32>
    %76 = tpu.matmul %63, %75, %cst_21 {dimension_numbers = #tpu.dot_dimension_numbers<[2], [2], [1], [1], [0, 0, 0, 1, 1, 1], [0], [0]>} : vector<4x8x64xbf16>, vector<4x64x64xbf16>, vector<4x8x64xf32> -> vector<4x8x64xf32>
    "tpu.trace_stop"() : () -> ()
    %77 = vector.shape_cast %76 : vector<4x8x64xf32> to vector<32x64xf32>
    %78 = tpu.concatenate %57, %77 in 1 : vector<32x64xf32>, vector<32x64xf32> -> vector<32x128xf32>
    %79 = arith.truncf %78 : vector<32x128xf32> to vector<32x128xbf16>
    %c0_22 = arith.constant 0 : index
    %c0_23 = arith.constant 0 : index
    %80 = vector.load %arg5[%c0_22, %c0_23] : memref<32x32xbf16, #tpu.memory_space<vmem>>, vector<32x32xbf16>
    %cst_24 = arith.constant dense<0.000000e+00> : vector<32x128xf32>
    %81 = tpu.matmul %80, %79, %cst_24 {dimension_numbers = #tpu.dot_dimension_numbers<[1], [0], [0], [1], [0, 0, 1, 1], [], []>} : vector<32x32xbf16>, vector<32x128xbf16>, vector<32x128xf32> -> vector<32x128xf32>
    %c0_25 = arith.constant 0 : index
    %c0_26 = arith.constant 0 : index
    %82 = vector.load %arg6[%c0_25, %c0_26] : memref<32x1xf32, #tpu.memory_space<vmem>>, vector<32x1xf32>
    %83 = vector.broadcast %82 : vector<32x1xf32> to vector<32x128xf32>
    %84 = arith.addf %81, %83 : vector<32x128xf32>
    %85 = arith.addf %0, %84 : vector<32x128xf32>
    %c0_27 = arith.constant 0 : index
    %c0_28 = arith.constant 0 : index
    %86 = vector.load %arg7[%c0_27, %c0_28] : memref<128x32xbf16, #tpu.memory_space<vmem>>, vector<128x32xbf16>
    %87 = arith.truncf %85 : vector<32x128xf32> to vector<32x128xbf16>
    %cst_29 = arith.constant dense<0.000000e+00> : vector<128x128xf32>
    %88 = tpu.matmul %86, %87, %cst_29 {dimension_numbers = #tpu.dot_dimension_numbers<[1], [0], [0], [1], [0, 0, 1, 1], [], []>} : vector<128x32xbf16>, vector<32x128xbf16>, vector<128x128xf32> -> vector<128x128xf32>
    %c0_30 = arith.constant 0 : index
    %c0_31 = arith.constant 0 : index
    %89 = vector.load %arg8[%c0_30, %c0_31] : memref<128x1xf32, #tpu.memory_space<vmem>>, vector<128x1xf32>
    %90 = vector.broadcast %89 : vector<128x1xf32> to vector<128x128xf32>
    %91 = arith.addf %88, %90 : vector<128x128xf32>
    %92 = arith.mulf %91, %91 : vector<128x128xf32>
    %93 = arith.mulf %91, %92 : vector<128x128xf32>
    %cst_32 = arith.constant 4.471500e-02 : f32
    %94 = vector.broadcast %cst_32 : f32 to vector<128x128xf32>
    %95 = arith.mulf %94, %93 : vector<128x128xf32>
    %96 = arith.addf %91, %95 : vector<128x128xf32>
    %cst_33 = arith.constant 0.797884583 : f32
    %97 = vector.broadcast %cst_33 : f32 to vector<128x128xf32>
    %98 = arith.mulf %97, %96 : vector<128x128xf32>
    %99 = math.tanh %98 : vector<128x128xf32>
    %cst_34 = arith.constant 1.000000e+00 : f32
    %100 = vector.broadcast %cst_34 : f32 to vector<128x128xf32>
    %101 = arith.addf %100, %99 : vector<128x128xf32>
    %cst_35 = arith.constant 5.000000e-01 : f32
    %102 = vector.broadcast %cst_35 : f32 to vector<128x128xf32>
    %103 = arith.mulf %102, %101 : vector<128x128xf32>
    %104 = arith.mulf %91, %103 : vector<128x128xf32>
    %c0_36 = arith.constant 0 : index
    %c0_37 = arith.constant 0 : index
    %105 = vector.load %arg9[%c0_36, %c0_37] : memref<32x128xbf16, #tpu.memory_space<vmem>>, vector<32x128xbf16>
    %106 = arith.truncf %104 : vector<128x128xf32> to vector<128x128xbf16>
    %cst_38 = arith.constant dense<0.000000e+00> : vector<32x128xf32>
    %107 = tpu.matmul %105, %106, %cst_38 {dimension_numbers = #tpu.dot_dimension_numbers<[1], [0], [0], [1], [0, 0, 1, 1], [], []>} : vector<32x128xbf16>, vector<128x128xbf16>, vector<32x128xf32> -> vector<32x128xf32>
    %c0_39 = arith.constant 0 : index
    %c0_40 = arith.constant 0 : index
    %108 = vector.load %arg10[%c0_39, %c0_40] : memref<32x1xf32, #tpu.memory_space<vmem>>, vector<32x1xf32>
    %109 = vector.broadcast %108 : vector<32x1xf32> to vector<32x128xf32>
    %110 = arith.addf %107, %109 : vector<32x128xf32>
    %111 = arith.addf %85, %110 : vector<32x128xf32>
    %c0_41 = arith.constant 0 : index
    %c0_42 = arith.constant 0 : index
    %112 = vector.load %arg11[%c0_41, %c0_42] : memref<32x128xf32, #tpu.memory_space<vmem>>, vector<32x128xf32>
    tpu.vector_store %arg11[%c0_41, %c0_42], %111 {strides = array<i32>} : memref<32x128xf32, #tpu.memory_space<vmem>>, vector<32x128xf32>,
    return
  }
}

</mosaic_0001>

<bundles_post_ra>
// kernel: tpu_custom_call.1
= control target key start
LH: loop header
LB: loop body
LE: loop exit
PB: predicated region body
PF: predicated region fallthrough
CT: control target
= control target key end

     0   :  { %v3974_v2 = vmov 0   ;;  %vm251_vm0 = vcmask 261120   ;;  %s5409_s0 = inlined_call_operand.vmem [shape: f32[32,128], index: 0, kind: input, shape index: {}]   ;;  %s5410_s1 = inlined_call_operand.vmem [shape: f32[32,1], index: 1, kind: input, shape index: {}]   ;;  %s5411_s2 = inlined_call_operand.vmem [shape: f32[32,1], index: 2, kind: input, shape index: {}]   ;;  %s5412_s3 = inlined_call_operand.vmem [shape: bf16[96,32], index: 3, kind: input, shape index: {}]   ;;  %s5413_s4 = inlined_call_operand.vmem [shape: f32[96,1], index: 4, kind: input, shape index: {}]   ;;  %s5414_s5 = inlined_call_operand.vmem [shape: bf16[32,32], index: 5, kind: input, shape index: {}]   ;;  %s5415_s6 = inlined_call_operand.vmem [shape: f32[32,1], index: 6, kind: input, shape index: {}]   ;;  %s5416_s7 = inlined_call_operand.vmem [shape: bf16[128,32], index: 7, kind: input, shape index: {}]   ;;  %s5417_s8 = inlined_call_operand.vmem [shape: f32[128,1], index: 8, kind: input, shape index: {}]   ;;  %s5418_s9 = inlined_call_operand.vmem [shape: bf16[32,128], index: 9, kind: input, shape index: {}]   ;;  %s5419_s10 = inlined_call_operand.vmem [shape: f32[32,1], index: 10, kind: input, shape index: {}]   ;;  %s5420_s11 = inlined_call_operand.hbm [shape: f32[32,128], index: 11, kind: output, shape index: {}]  }
   0x1   :  { %v107_v0 = vld [vmem:[%s5411_s2] sm:$0xff]  ;;  %3463 = vset.pattern.permute.xlu1 %v3974_v2  ;;  %3462 = vset.pattern.permute.xlu0 %v3974_v2  ;;  %v108_v3 = vld [vmem:[%s5411_s2 + $0x8] sm:$0xff]  ;;  %v82_v5 = vld [vmem:[%s5410_s1 + $0x18] sm:$0xff] }
   0x2   :  { %v79_v1 = vld [vmem:[%s5410_s1] sm:$0xff]  ;;  %113 = vperm.xlu1 %3463, %v107_v0   ;;  %v80_v4 = vld [vmem:[%s5410_s1 + $0x8] sm:$0xff]  ;;  %v81_v6 = vld [vmem:[%s5410_s1 + $0x10] sm:$0xff] }
   0x3   :  { %85 = vperm.xlu0 %3462, %v79_v1   ;;  %v110_v7 = vld [vmem:[%s5411_s2 + $0x18] sm:$0xff]  ;;  %v109_v8 = vld [vmem:[%s5411_s2 + $0x10] sm:$0xff]  ;;  %v150_v9 = vld [vmem:[%s5413_s4 + $0x8] sm:$0xff] }
   0x4   :  { %v149_v10 = vld [vmem:[%s5413_s4] sm:$0xff]  ;;  %v151_v11 = vld [vmem:[%s5413_s4 + $0x10] sm:$0xff] }
   0x5   :  { %v153_v12 = vld [vmem:[%s5413_s4 + $0x20] sm:$0xff] }
   0x6   :  { %118 = vperm.xlu1 %3463, %v108_v3   ;;  %v3638_v13 = vld [vmem:[%s5412_s3] sm:$0xff]  }
   0x7   :  { %90 = vperm.xlu0 %3462, %v80_v4  }
   0xa   :  { %100 = vperm.xlu1 %3463, %v82_v5  }
   0xb   :  { %95 = vperm.xlu0 %3462, %v81_v6  }
   0xe   :  { %128 = vperm.xlu1 %3463, %v110_v7  }
   0xf   :  { %123 = vperm.xlu0 %3462, %v109_v8  }
  0x12   :  { %168 = vperm.xlu1 %3463, %v150_v9  }
  0x13   :  { %163 = vperm.xlu0 %3462, %v149_v10  }
  0x14   :  { %16 = vsyncpa [#allocation3], 0  ;;  %v40_v14 = vld [vmem:[%s5409_s0] sm:$0xff]  ;;  %v41_v15 = vld [vmem:[%s5409_s0 + $0x8] sm:$0xff]  ;;  %3211 = vmatprep.mubr.msk.bf16.mxu0 %vm251_vm0, %v3638_v13  ;;  %vm516_vm1 = vcmask 1043456   ;;  %vm503_vm2 = vcmask 64512  }
  0x15   :  { %v154_v16 = vld [vmem:[%s5413_s4 + $0x28] sm:$0xff]  ;;  %v152_v17 = vld [vmem:[%s5413_s4 + $0x18] sm:$0xff]  ;;  %v44_v18 = vadd.f32 %v41_v15, %v40_v14  ;;  %v42_v19 = vld [vmem:[%s5409_s0 + $0x10] sm:$0xff]  ;;  %vm825_vm3 = vcmask 523264   ;;  %vm3976_vm4 = vmmov 0   ;;  %s3977_s13 = smov 64  }
  0x16   :  { %173 = vperm.xlu1 %3463, %v151_v11   ;;  %v155_v20 = vld [vmem:[%s5413_s4 + $0x30] sm:$0xff]  ;;  %v43_v22 = vld [vmem:[%s5409_s0 + $0x18] sm:$0xff]  ;;  %v3639_v10 = vld [vmem:[%s5412_s3 + $0x8] sm:$0xff]  }
  0x17   :  { %183 = vperm.xlu0 %3462, %v153_v12   ;;  %v45_v21 = vadd.f32 %v44_v18, %v42_v19  ;;  %v156_v23 = vld [vmem:[%s5413_s4 + $0x38] sm:$0xff]  ;;  %v3640_v11 = vld [vmem:[%s5412_s3 + $0x10] sm:$0xff]  }
  0x18   :  { %v3641_v12 = vld [vmem:[%s5412_s3 + $0x18] sm:$0xff]  }
  0x19   :  { %v46_v24 = vadd.f32 %v45_v21, %v43_v22 }
  0x1a   :  { %188 = vperm.xlu1 %3463, %v154_v16  }
  0x1b   :  { %178 = vperm.xlu0 %3462, %v152_v17   ;;  %v47_v25 = vrot.slane %v46_v24, 4 }
  0x1d   :  { %v48_v26 = vadd.f32 %v47_v25, %v46_v24 }
  0x1e   :  { %193 = vperm.xlu1 %3463, %v155_v20  }
  0x1f   :  { %v49_v27 = vrot.slane %v48_v26, 2 }
  0x21   :  { %v50_v28 = vadd.f32 %v49_v27, %v48_v26 }
  0x22   :  { %198 = vperm.xlu1 %3463, %v156_v23  }
  0x23   :  { %v51_v29 = vrot.slane %v50_v28, 1 }
  0x25   :  { %v52_v30 = vadd.f32 %v51_v29, %v50_v28 }
  0x27   :  { %v54_v31 = vmul.f32 0.03125, %v52_v30 }
  0x29   :  { %v55_v32 = vsub.f32 %v40_v14, %v54_v31  ;;  %v56_v33 = vsub.f32 %v41_v15, %v54_v31  ;;  %v57_v34 = vsub.f32 %v42_v19, %v54_v31  ;;  %v58_v37 = vsub.f32 %v43_v22, %v54_v31 }
  0x2b   :  { %v59_v35 = vmul.f32 %v55_v32, %v55_v32  ;;  %v60_v36 = vmul.f32 %v56_v33, %v56_v33  ;;  %v61_v38 = vmul.f32 %v57_v34, %v57_v34  ;;  %v62_v40 = vmul.f32 %v58_v37, %v58_v37 }
  0x2d   :  { %v63_v39 = vadd.f32 %v60_v36, %v59_v35 }
  0x2f   :  { %v64_v41 = vadd.f32 %v63_v39, %v61_v38 }
  0x31   :  { %v65_v42 = vadd.f32 %v64_v41, %v62_v40  ;;  %v3642_v40 = vld [vmem:[%s5412_s3 + $0x20] sm:$0xff]  }
  0x33   :  { %v66_v43 = vrot.slane %v65_v42, 4 }
  0x35   :  { %v67_v44 = vadd.f32 %v66_v43, %v65_v42  ;;  %v3643_v43 = vld [vmem:[%s5412_s3 + $0x28] sm:$0xff]  }
  0x37   :  { %v68_v45 = vrot.slane %v67_v44, 2 }
  0x39   :  { %v69_v46 = vadd.f32 %v68_v45, %v67_v44 }
  0x3b   :  { %v70_v47 = vrot.slane %v69_v46, 1 }
  0x3d   :  { %v71_v48 = vadd.f32 %v70_v47, %v69_v46 }
  0x3f   :  { %v72_v49 = vmul.f32 0.03125, %v71_v48 }
  0x41   :  { %v73_v50 = vadd.f32 1e-05, %v72_v49 }
  0x43   :  { %3656 = vrsqrt.f32 %v73_v50 }
  0x4d   :  { %v3657_v51 = vpop.eup %3656 }
  0x4e   :  { %v75_v52 = vmul.f32 %v3657_v51, %v55_v32  ;;  %v76_v55 = vmul.f32 %v3657_v51, %v56_v33  ;;  %v78_v60 = vmul.f32 %v3657_v51, %v58_v37  ;;  %v77_v61 = vmul.f32 %v3657_v51, %v57_v34 }
  0x81   :  { %v114_v53 = vpop.permute.xlu1 %113 }
  0x82   :  { %v86_v54 = vpop.permute.xlu0 %85 }
  0x83   :  { %v103_v56 = vmul.f32 %v86_v54, %v75_v52 }
  0x85   :  { %v119_v57 = vpop.permute.xlu1 %118  ;;  %v131_v62 = vadd.f32 %v114_v53, %v103_v56 }
  0x86   :  { %v91_v58 = vpop.permute.xlu0 %90 }
  0x87   :  { %v104_v59 = vmul.f32 %v91_v58, %v76_v55 }
  0x89   :  { %v132_v63 = vadd.f32 %v119_v57, %v104_v59  ;;  %v101_v0 = vpop.permute.xlu1 %100 }
  0x8a   :  { %v96_v1 = vpop.permute.xlu0 %95  ;;  %v106_v3 = vmul.f32 %v101_v0, %v78_v60 }
  0x8b   :  { %v147_v2 = vpack.c.bf16 %v132_v63, %v131_v62  ;;  %v105_v4 = vmul.f32 %v96_v1, %v77_v61 }
  0x8d   :  { %3207 = vmatprep.subr.bf16.mxu0 %v147_v2  ;;  %v129_v5 = vpop.permute.xlu1 %128 }
  0x8e   :  { %v124_v6 = vpop.permute.xlu0 %123  ;;  %3208 = vmatpush3.bf16.msra.mxu0 %v147_v2  ;;  %v134_v7 = vadd.f32 %v129_v5, %v106_v3 }
  0x8f   :  { %v133_v8 = vadd.f32 %v124_v6, %v105_v4 }
  0x91   :  { %v148_v9 = vpack.c.bf16 %v134_v7, %v133_v8  ;;  %v169_v13 = vpop.permute.xlu1 %168 }
  0x92   :  { %v164_v14 = vpop.permute.xlu0 %163 }
  0x93   :  { %3209 = vmatprep.subr.bf16.mxu0 %v148_v9 }
  0x94   :  { %3210 = vmatpush3.bf16.msra.mxu0 %v148_v9 }
  0x95   :  { %v174_v15 = vpop.permute.xlu1 %173 }
  0x96   :  { %v184_v16 = vpop.permute.xlu0 %183 }
  0x97   :  { %3212 = vmatmul.mubr.msk.bf16.vlgmr.msra.gmra.mrb[0].mxu0 %vm251_vm0, %v3639_v10 }
  0x98   :  { %3215 = vmatprep.mubr.msk.bf16.mxu0 %vm251_vm0, %v3640_v11 }
  0x99   :  { %v189_v18 = vpop.permute.xlu1 %188 }
  0x9a   :  { %v179_v20 = vpop.permute.xlu0 %178 }
  0x9d   :  { %v194_v29 = vpop.permute.xlu1 %193 }
  0x9f   :  { %3216 = vmatmul.mubr.msk.bf16.gmra.mrb[4].mxu0 %vm251_vm0, %v3641_v12 }
  0xa0   :  { %3219 = vmatprep.mubr.msk.bf16.mxu0 %vm251_vm0, %v3642_v40 }
  0xa1   :  { %v199_v44 = vpop.permute.xlu1 %198 }
  0xa7   :  { %3220 = vmatmul.mubr.msk.bf16.gmra.mrb[8].mxu0 %vm251_vm0, %v3643_v43 }
 0x16a   :  { %v3213_v17 = vpop.f32.mrb[0].mxu0 }
 0x16b   :  { %v304_v19 = vpop.f32.mrb[1].mxu0  ;;  %v313_v22 = vadd.f32 %v3213_v17, %v174_v15 }
 0x16c   :  { %v3214_v21 = vpop.f32.mrb[2].mxu0  ;;  %v305_v25 = vadd.f32 %v304_v19, %v164_v14 }
 0x16d   :  { %v316_v23 = vadd.f32 %v3214_v21, %v179_v20  ;;  %v307_v24 = vpop.f32.mrb[3].mxu0 }
 0x16e   :  { %v308_v26 = vadd.f32 %v307_v24, %v169_v13 }
 0x16f   :  { %v3546_v27 = vpack.i.bf16 %v316_v23, %v313_v22 }
 0x170   :  { %v3464_v28 = vpack.i.bf16 %v308_v26, %v305_v25 }
 0x171   :  { %3547 = vxpose.xlu1.b32.start.end [1/1] (short) %v3546_v27, 128 }
 0x172   :  { %v3217_v30 = vpop.f32.mrb[4].mxu0  ;;  %3465 = vxpose.xlu0.b32.start.end [1/1] (short) %v3464_v28, 128 }
 0x173   :  { %v329_v31 = vadd.f32 %v3217_v30, %v194_v29  ;;  %v320_v32 = vpop.f32.mrb[5].mxu0 }
 0x174   :  { %v321_v33 = vadd.f32 %v320_v32, %v184_v16  ;;  %v3218_v34 = vpop.f32.mrb[6].mxu0 }
 0x175   :  { %v4117_v35 = vpack.c.bf16 %v329_v31, %v329_v31  ;;  %v323_v36 = vpop.f32.mrb[7].mxu0  ;;  %v332_v59 = vadd.f32 %v3218_v34, %v199_v44 }
 0x176   :  { %v4119_v37 = vpack.c.bf16 %v321_v33, %v321_v33  ;;  %v324_v38 = vadd.f32 %v323_v36, %v189_v18 }
 0x177   :  { %3449 = vmatprep.subr.msk.bf16.mxu0 %vm516_vm1, %v4117_v35  ;;  %v678_v39 = vsel %vm516_vm1, %v4117_v35, 0  ;;  %v4156_v4 = vpack.c.bf16 %v332_v59, %v332_v59 }
 0x178   :  { %v4128_v41 = vpack.c.bf16 %v324_v38, %v324_v38  ;;  %3447 = vmatprep.subr.msk.bf16.mxu1 %vm516_vm1, %v4119_v37  ;;  %3244 = vmatpush3.bf16.msra.mxu0 %v678_v39  ;;  %v518_v42 = vsel %vm516_vm1, %v4119_v37, 0 }
 0x179   :  { %3224 = vmatpush3.bf16.msra.mxu1 %v518_v42  ;;  %v758_v33 = vsel %vm516_vm1, %v4156_v4, 0 }
 0x17a   :  { %3448 = vmatprep.subr.msk.bf16.mxu1 %vm516_vm1, %v4128_v41  ;;  %v598_v5 = vsel %vm516_vm1, %v4128_v41, 0 }
 0x1f1   :  { %v4141_v45 = vpop.trf.xlu1 }
 0x1f2   :  { %v3466_v46 = vpop.trf.xlu0  ;;  %v3549_v47 = vunpack.i.l.bf16 %v4141_v45  ;;  %v3552_v36 = vunpack.i.h.bf16 %v4141_v45 }
 0x1f3   :  { %v3467_v52 = vunpack.i.l.bf16 %v3466_v46  ;;  %v3470_v23 = vunpack.i.h.bf16 %v3466_v46 }
 0x1f5   :  { %v4144_v48 = vpop.trf.xlu1 }
 0x1f6   :  { %v3554_v49 = vunpack.i.l.bf16 %v4144_v48  ;;  %v3471_v50 = vpop.trf.xlu0  ;;  %v3557_v38 = vunpack.i.h.bf16 %v4144_v48 }
 0x1f7   :  { %v3472_v51 = vunpack.i.l.bf16 %v3471_v50  ;;  %v3475_v18 = vunpack.i.h.bf16 %v3471_v50 }
 0x1f8   :  { %v487_v53 = vpack.c.bf16 %v3554_v49, %v3549_v47  ;;  %v491_v42 = vpack.c.bf16 %v3557_v38, %v3552_v36 }
 0x1f9   :  { %v4147_v54 = vpop.trf.xlu1  ;;  %v479_v55 = vpack.c.bf16 %v3472_v51, %v3467_v52  ;;  %v483_v26 = vpack.c.bf16 %v3475_v18, %v3470_v23  ;;  %v4181_v52 = vpop.f32.mrb[8].mxu0 }
 0x1fa   :  { %v3476_v56 = vpop.trf.xlu0  ;;  %3245 = vmatprep.mubr.msk.bf16.mxu0 %vm503_vm2, %v487_v53  ;;  %v3559_v57 = vunpack.i.l.bf16 %v4147_v54  ;;  %v3562_v43 = vunpack.i.h.bf16 %v4147_v54  ;;  %v4183_v53 = vpop.f32.mrb[9].mxu0 }
 0x1fb   :  { %3225 = vmatprep.mubr.msk.bf16.mxu1 %vm503_vm2, %v479_v55  ;;  %v3477_v62 = vunpack.i.l.bf16 %v3476_v56  ;;  %v3480_v29 = vunpack.i.h.bf16 %v3476_v56  ;;  %v4185_v54 = vpop.f32.mrb[10].mxu0 }
 0x1fc   :  { %5433 = vst [vmem:[#allocation5_spill] sm:$0xff] %v4185_v54  ;;  %v4187_v55 = vpop.f32.mrb[11].mxu0  ;;  %v5444_v54 = vmov 0.0  }
 0x1fd   :  { %v4152_v58 = vpop.trf.xlu1 }
 0x1fe   :  { %v3564_v60 = vunpack.i.l.bf16 %v4152_v58  ;;  %v3481_v61 = vpop.trf.xlu0  ;;  %v3567_v44 = vunpack.i.h.bf16 %v4152_v58 }
 0x1ff   :  { %v3482_v63 = vunpack.i.l.bf16 %v3481_v61  ;;  %v3485_v27 = vunpack.i.h.bf16 %v3481_v61 }
 0x200   :  { %v488_v0 = vpack.c.bf16 %v3564_v60, %v3559_v57  ;;  %v492_v49 = vpack.c.bf16 %v3567_v44, %v3562_v43 }
 0x201   :  { %v3568_v1 = vpop.trf.xlu1  ;;  %v480_v2 = vpack.c.bf16 %v3482_v63, %v3477_v62  ;;  %v484_v31 = vpack.c.bf16 %v3485_v27, %v3480_v29 }
 0x202   :  { %3246 = vmatmul.mubr.msk.bf16.vlgmr.msra.gmra.mrb[12].mxu0 %vm503_vm2, %v488_v0  ;;  %v3486_v3 = vpop.trf.xlu0  ;;  %v3569_v6 = vunpack.i.l.bf16 %v3568_v1  ;;  %v3572_v46 = vunpack.i.h.bf16 %v3568_v1 }
 0x203   :  { %3226 = vmatmul.mubr.msk.bf16.vlgmr.msra.gmra.mrb[0].mxu1 %vm503_vm2, %v480_v2  ;;  %v3487_v10 = vunpack.i.l.bf16 %v3486_v3  ;;  %v3490_v30 = vunpack.i.h.bf16 %v3486_v3 }
 0x204   :  { %3234 = vmatpush3.bf16.msra.mxu1 %v598_v5 }
 0x205   :  { %3450 = vmatprep.subr.msk.bf16.mxu1 %vm516_vm1, %v4156_v4  ;;  %v3573_v7 = vpop.trf.xlu1 }
 0x206   :  { %v3574_v8 = vunpack.i.l.bf16 %v3573_v7  ;;  %v3491_v9 = vpop.trf.xlu0  ;;  %v3577_v47 = vunpack.i.h.bf16 %v3573_v7 }
 0x207   :  { %v3492_v11 = vunpack.i.l.bf16 %v3491_v9  ;;  %v3495_v28 = vunpack.i.h.bf16 %v3491_v9 }
 0x208   :  { %v489_v12 = vpack.c.bf16 %v3574_v8, %v3569_v6  ;;  %v493_v50 = vpack.c.bf16 %v3577_v47, %v3572_v46 }
 0x209   :  { %v3578_v13 = vpop.trf.xlu1  ;;  %v481_v14 = vpack.c.bf16 %v3492_v11, %v3487_v10  ;;  %v485_v32 = vpack.c.bf16 %v3495_v28, %v3490_v30 }
 0x20a   :  { %v3496_v15 = vpop.trf.xlu0  ;;  %3249 = vmatprep.mubr.msk.bf16.mxu0 %vm503_vm2, %v489_v12  ;;  %v3579_v16 = vunpack.i.l.bf16 %v3578_v13  ;;  %v3582_v45 = vunpack.i.h.bf16 %v3578_v13 }
 0x20b   :  { %3229 = vmatprep.mubr.msk.bf16.mxu1 %vm503_vm2, %v481_v14  ;;  %v3497_v21 = vunpack.i.l.bf16 %v3496_v15  ;;  %v3500_v39 = vunpack.i.h.bf16 %v3496_v15 }
 0x20d   :  { %v3583_v17 = vpop.trf.xlu1 }
 0x20e   :  { %v3584_v19 = vunpack.i.l.bf16 %v3583_v17  ;;  %v3501_v20 = vpop.trf.xlu0  ;;  %v3587_v48 = vunpack.i.h.bf16 %v3583_v17 }
 0x20f   :  { %v3502_v22 = vunpack.i.l.bf16 %v3501_v20  ;;  %v3505_v34 = vunpack.i.h.bf16 %v3501_v20 }
 0x210   :  { %v490_v24 = vpack.c.bf16 %v3584_v19, %v3579_v16  ;;  %v494_v51 = vpack.c.bf16 %v3587_v48, %v3582_v45 }
 0x211   :  { %v482_v25 = vpack.c.bf16 %v3502_v22, %v3497_v21  ;;  %v486_v40 = vpack.c.bf16 %v3505_v34, %v3500_v39  ;;  %v4191_v57 = vpop.trf.xlu1 }
 0x212   :  { %3250 = vmatmul.mubr.msk.bf16.gmra.mrb[16].mxu0 %vm503_vm2, %v490_v24  ;;  %v4189_v56 = vpop.trf.xlu0  ;;  %5434 = vst [vmem:[#allocation6_spill] sm:$0xff] %v4191_v57 }
 0x213   :  { %3230 = vmatmul.mubr.msk.bf16.gmra.mrb[4].mxu1 %vm503_vm2, %v482_v25 }
 0x214   :  { %3235 = vmatprep.mubr.msk.bf16.mxu1 %vm503_vm2, %v483_v26 }
 0x215   :  { %v4195_v59 = vpop.trf.xlu1 }
 0x216   :  { %v4193_v58 = vpop.trf.xlu0  ;;  %5435 = vst [vmem:[#allocation7_spill] sm:$0xff] %v4195_v59 }
 0x219   :  { %v4199_v61 = vpop.trf.xlu1 }
 0x21a   :  { %v4197_v60 = vpop.trf.xlu0  ;;  %5436 = vst [vmem:[#allocation8_spill] sm:$0xff] %v4199_v61 }
 0x21b   :  { %3236 = vmatmul.mubr.msk.bf16.vlgmr.msra.gmra.mrb[8].mxu1 %vm503_vm2, %v484_v31 }
 0x21c   :  { %3254 = vmatpush3.bf16.msra.mxu1 %v758_v33  ;;  %3239 = vmatprep.mubr.msk.bf16.mxu1 %vm503_vm2, %v485_v32 }
 0x21d   :  { %v4203_v63 = vpop.trf.xlu1 }
 0x21e   :  { %v4201_v62 = vpop.trf.xlu0  ;;  %5437 = vst [vmem:[#allocation9_spill] sm:$0xff] %v4203_v63 }
 0x221   :  { %v4207_v1 = vpop.trf.xlu1 }
 0x222   :  { %v4205_v0 = vpop.trf.xlu0  ;;  %5438 = vst [vmem:[#allocation10_spill] sm:$0xff] %v4207_v1 }
 0x223   :  { %3240 = vmatmul.mubr.msk.bf16.gmra.mrb[12].mxu1 %vm503_vm2, %v486_v40 }
 0x224   :  { %3255 = vmatprep.mubr.msk.bf16.mxu1 %vm503_vm2, %v491_v42 }
 0x225   :  { %v4211_v3 = vpop.trf.xlu1 }
 0x226   :  { %v4209_v2 = vpop.trf.xlu0  ;;  %5439 = vst [vmem:[#allocation11_spill] sm:$0xff] %v4211_v3 }
 0x229   :  { %v4215_v6 = vpop.trf.xlu1 }
 0x22a   :  { %v4213_v5 = vpop.trf.xlu0  ;;  %5441 = vst [vmem:[#allocation13_spill] sm:$0xff] %v4215_v6 }
 0x22b   :  { %3256 = vmatmul.mubr.msk.bf16.vlgmr.msra.gmra.mrb[16].mxu1 %vm503_vm2, %v492_v49  ;;  %5440 = vst [vmem:[#allocation12_spill] sm:$0xff] %v4213_v5 }
 0x22c   :  { %3259 = vmatprep.mubr.msk.bf16.mxu1 %vm503_vm2, %v493_v50 }
 0x22d   :  { %v4219_v8 = vpop.trf.xlu1 }
 0x22e   :  { %v4217_v7 = vpop.trf.xlu0  ;;  %5443 = vst [vmem:[#allocation15_spill] sm:$0xff] %v4219_v8 }
 0x22f   :  { %5442 = vst [vmem:[#allocation14_spill] sm:$0xff] %v4217_v7 }
 0x233   :  { %3260 = vmatmul.mubr.msk.bf16.gmra.mrb[20].mxu1 %vm503_vm2, %v494_v51 }
 0x2d5   :  { %v4221_v9 = vpop.f32.mrb[12].mxu0 }
 0x2d6   :  { %v4223_v10 = vpop.f32.mrb[0].mxu1  ;;  %v4225_v11 = vpop.f32.mrb[13].mxu0  ;;  %v880_v12 = vsel %vm825_vm3, %v4221_v9, -inf }
 0x2d7   :  { %881 = vmax.xlane.f32.xlu1 %v880_v12  ;;  %v4229_v13 = vpop.f32.mrb[1].mxu1  ;;  %v4231_v14 = vpop.f32.mrb[14].mxu0  ;;  %v832_v15 = vsel %vm825_vm3, %v4223_v10, -inf  ;;  %v874_v19 = vsel %vm825_vm3, %v4225_v11, -inf }
 0x2d8   :  { %v4235_v16 = vpop.f32.mrb[15].mxu0  ;;  %833 = vmax.xlane.f32.xlu0 %v832_v15  ;;  %v4237_v17 = vpop.f32.mrb[2].mxu1  ;;  %v826_v20 = vsel %vm825_vm3, %v4229_v13, -inf  ;;  %v883_v22 = vsel %vm825_vm3, %v4231_v14, -inf }
 0x2d9   :  { %v4239_v18 = vpop.f32.mrb[3].mxu1  ;;  %v835_v23 = vsel %vm825_vm3, %v4237_v17, -inf  ;;  %v877_v30 = vsel %vm825_vm3, %v4235_v16, -inf }
 0x2da   :  { %v829_v21 = vsel %vm825_vm3, %v4239_v18, -inf }
 0x2db   :  { %875 = vmax.xlane.f32.xlu1 %v874_v19 }
 0x2dc   :  { %827 = vmax.xlane.f32.xlu0 %v826_v20 }
 0x2df   :  { %830 = vmax.xlane.f32.xlu1 %v829_v21 }
 0x2e0   :  { %884 = vmax.xlane.f32.xlu0 %v883_v22 }
 0x2e4   :  { %836 = vmax.xlane.f32.xlu0 %v835_v23 }
 0x2e5   :  { %v4251_v24 = vpop.f32.mrb[16].mxu0 }
 0x2e6   :  { %v4253_v25 = vpop.f32.mrb[4].mxu1  ;;  %v4255_v26 = vpop.f32.mrb[17].mxu0  ;;  %v892_v27 = vsel %vm825_vm3, %v4251_v24, -inf }
 0x2e7   :  { %v4259_v28 = vpop.f32.mrb[18].mxu0  ;;  %893 = vmax.xlane.f32.xlu1 %v892_v27  ;;  %v4261_v29 = vpop.f32.mrb[5].mxu1  ;;  %v844_v34 = vsel %vm825_vm3, %v4253_v25, -inf  ;;  %v886_v39 = vsel %vm825_vm3, %v4255_v26, -inf }
 0x2e8   :  { %v4265_v31 = vpop.f32.mrb[19].mxu0  ;;  %878 = vmax.xlane.f32.xlu0 %v877_v30  ;;  %v4267_v32 = vpop.f32.mrb[6].mxu1  ;;  %v838_v46 = vsel %vm825_vm3, %v4261_v29, -inf }
 0x2e9   :  { %v4269_v33 = vpop.f32.mrb[7].mxu1  ;;  %v847_v36 = vsel %vm825_vm3, %v4267_v32, -inf  ;;  %v889_v42 = vsel %vm825_vm3, %v4265_v31, -inf }
 0x2ea   :  { %v841_v47 = vsel %vm825_vm3, %v4269_v33, -inf }
 0x2eb   :  { %845 = vmax.xlane.f32.xlu1 %v844_v34 }
 0x2ec   :  { %848 = vmax.xlane.f32.xlu0 %v847_v36  ;;  %v895_v36 = vsel %vm825_vm3, %v4259_v28, -inf }
 0x2ee   :  { %v4275_v38 = vpop.f32.mrb[8].mxu1 }
 0x2ef   :  { %887 = vmax.xlane.f32.xlu1 %v886_v39  ;;  %v4279_v40 = vpop.f32.mrb[9].mxu1  ;;  %v856_v50 = vsel %vm825_vm3, %v4275_v38, -inf }
 0x2f0   :  { %890 = vmax.xlane.f32.xlu0 %v889_v42  ;;  %v4283_v43 = vpop.f32.mrb[10].mxu1  ;;  %v850_v48 = vsel %vm825_vm3, %v4279_v40, -inf }
 0x2f1   :  { %v4285_v44 = vpop.f32.mrb[11].mxu1  ;;  %v859_v19 = vsel %vm825_vm3, %v4283_v43, -inf }
 0x2f2   :  { %v853_v23 = vsel %vm825_vm3, %v4285_v44, -inf }
 0x2f3   :  { %839 = vmax.xlane.f32.xlu1 %v838_v46 }
 0x2f4   :  { %842 = vmax.xlane.f32.xlu0 %v841_v47 }
 0x2f6   :  { %v4291_v49 = vpop.f32.mrb[12].mxu1 }
 0x2f7   :  { %857 = vmax.xlane.f32.xlu1 %v856_v50  ;;  %v4295_v45 = vpop.f32.mrb[13].mxu1  ;;  %v868_v15 = vsel %vm825_vm3, %v4291_v49, -inf }
 0x2f8   :  { %851 = vmax.xlane.f32.xlu0 %v850_v48  ;;  %v4299_v51 = vpop.f32.mrb[14].mxu1  ;;  %v862_v21 = vsel %vm825_vm3, %v4295_v45, -inf }
 0x2f9   :  { %v4301_v12 = vpop.f32.mrb[15].mxu1  ;;  %v871_v47 = vsel %vm825_vm3, %v4299_v51, -inf }
 0x2fb   :  { %869 = vmax.xlane.f32.xlu1 %v868_v15 }
 0x2fc   :  { %860 = vmax.xlane.f32.xlu0 %v859_v19  ;;  %v865_v19 = vsel %vm825_vm3, %v4301_v12, -inf }
 0x2fe   :  { %v4307_v20 = vpop.f32.mrb[16].mxu1 }
 0x2ff   :  { %863 = vmax.xlane.f32.xlu1 %v862_v21  ;;  %v4311_v22 = vpop.f32.mrb[17].mxu1  ;;  %v904_v34 = vsel %vm825_vm3, %v4307_v20, -inf }
 0x300   :  { %854 = vmax.xlane.f32.xlu0 %v853_v23  ;;  %v4315_v27 = vpop.f32.mrb[18].mxu1  ;;  %v898_v42 = vsel %vm825_vm3, %v4311_v22, -inf }
 0x301   :  { %v4317_v30 = vpop.f32.mrb[19].mxu1  ;;  %v907_v23 = vsel %vm825_vm3, %v4315_v27, -inf }
 0x303   :  { %905 = vmax.xlane.f32.xlu1 %v904_v34  ;;  %v901_v34 = vsel %vm825_vm3, %v4317_v30, -inf }
 0x304   :  { %896 = vmax.xlane.f32.xlu0 %v895_v36 }
 0x306   :  { %v4323_v39 = vpop.f32.mrb[20].mxu1 }
 0x307   :  { %899 = vmax.xlane.f32.xlu1 %v898_v42  ;;  %v4327_v46 = vpop.f32.mrb[21].mxu1  ;;  %v916_v15 = vsel %vm825_vm3, %v4323_v39, -inf }
 0x308   :  { %872 = vmax.xlane.f32.xlu0 %v871_v47  ;;  %v4331_v50 = vpop.f32.mrb[22].mxu1  ;;  %v910_v21 = vsel %vm825_vm3, %v4327_v46, -inf }
 0x309   :  { %v4333_v48 = vpop.f32.mrb[23].mxu1  ;;  %v919_v36 = vsel %vm825_vm3, %v4331_v50, -inf }
 0x30a   :  { %v913_v42 = vsel %vm825_vm3, %v4333_v48, -inf }
 0x30b   :  { %917 = vmax.xlane.f32.xlu1 %v916_v15 }
 0x30c   :  { %866 = vmax.xlane.f32.xlu0 %v865_v19 }
 0x30f   :  { %911 = vmax.xlane.f32.xlu1 %v910_v21 }
 0x310   :  { %908 = vmax.xlane.f32.xlu0 %v907_v23 }
 0x314   :  { %902 = vmax.xlane.f32.xlu0 %v901_v34 }
 0x318   :  { %920 = vmax.xlane.f32.xlu0 %v919_v36 }
 0x31c   :  { %914 = vmax.xlane.f32.xlu0 %v913_v42 }
 0x364   :  { %v882_v47 = vpop.xlane.xlu1 %881 }
 0x365   :  { %v940_v15 = vsub.f32 %v4221_v9, %v882_v47  ;;  %v834_v19 = vpop.xlane.xlu0 %833 }
 0x366   :  { %v924_v21 = vsub.f32 %v4223_v10, %v834_v19 }
 0x367   :  { %v990_v8 = vmul.f32 1.442695, %v940_v15 }
 0x368   :  { %v958_v23 = vmul.f32 1.442695, %v924_v21  ;;  %v876_v6 = vpop.xlane.xlu1 %875 }
 0x369   :  { %3658 = vpow2.f32 %v990_v8  ;;  %v938_v34 = vsub.f32 %v4225_v11, %v876_v6  ;;  %v828_v3 = vpop.xlane.xlu0 %827 }
 0x36a   :  { %3660 = vpow2.f32 %v958_v23  ;;  %v922_v36 = vsub.f32 %v4229_v13, %v828_v3 }
 0x36b   :  { %v986_v1 = vmul.f32 1.442695, %v938_v34 }
 0x36c   :  { %v954_v61 = vmul.f32 1.442695, %v922_v36  ;;  %v831_v9 = vpop.xlane.xlu1 %830 }
 0x36d   :  { %v885_v63 = vpop.xlane.xlu0 %884  ;;  %3662 = vpow2.f32 %v986_v1  ;;  %v923_v6 = vsub.f32 %v4239_v18, %v831_v9 }
 0x36e   :  { %v941_v42 = vsub.f32 %v4231_v14, %v885_v63 }
 0x36f   :  { %v956_v14 = vmul.f32 1.442695, %v923_v6 }
 0x370   :  { %v992_v47 = vmul.f32 1.442695, %v941_v42 }
 0x371   :  { %v837_v59 = vpop.xlane.xlu0 %836 }
 0x372   :  { %3664 = vpow2.f32 %v992_v47  ;;  %v925_v10 = vsub.f32 %v4237_v17, %v837_v59 }
 0x373   :  { %v4355_v15 = vpop.eup %3658  ;;  %3666 = vpow2.f32 %v954_v61 }
 0x374   :  { %v960_v8 = vmul.f32 1.442695, %v925_v10  ;;  %v4358_v11 = vpop.xlane.xlu1 %893  ;;  %v1072_v3 = vsel %vm825_vm3, %v4355_v15, 0.0  ;;  %v4362_v63 = vpop.eup %3660 }
 0x375   :  { %v879_v1 = vpop.xlane.xlu0 %878  ;;  %1073 = vadd.xlane.f32.xlu1 %v1072_v3  ;;  %v1024_v61 = vsel %vm825_vm3, %v4362_v63, 0.0 }
 0x376   :  { %3668 = vpow2.f32 %v960_v8  ;;  %v939_v13 = vsub.f32 %v4235_v16, %v879_v1 }
 0x377   :  { %v4367_v18 = vpop.eup %3662 }
 0x378   :  { %v988_v59 = vmul.f32 1.442695, %v939_v13  ;;  %v846_v17 = vpop.xlane.xlu1 %845  ;;  %v1066_v9 = vsel %vm825_vm3, %v4367_v18, 0.0 }
 0x379   :  { %v928_v19 = vsub.f32 %v4253_v25, %v846_v17  ;;  %v849_v21 = vpop.xlane.xlu0 %848  ;;  %1025 = vadd.xlane.f32.xlu1 %v1024_v61 }
 0x37a   :  { %3670 = vpow2.f32 %v988_v59  ;;  %v929_v23 = vsub.f32 %v4267_v32, %v849_v21 }
 0x37b   :  { %v966_v34 = vmul.f32 1.442695, %v928_v19  ;;  %3672 = vpow2.f32 %v956_v14 }
 0x37c   :  { %v4371_v36 = vpop.eup %3664  ;;  %v968_v16 = vmul.f32 1.442695, %v929_v23  ;;  %v888_v42 = vpop.xlane.xlu1 %887 }
 0x37d   :  { %v4375_v47 = vpop.eup %3666  ;;  %3674 = vpow2.f32 %v966_v34  ;;  %v942_v10 = vsub.f32 %v4255_v26, %v888_v42  ;;  %v891_v25 = vpop.xlane.xlu0 %890  ;;  %1067 = vadd.xlane.f32.xlu1 %v1066_v9  ;;  %v1075_v6 = vsel %vm825_vm3, %v4371_v36, 0.0 }
 0x37e   :  { %v943_v32 = vsub.f32 %v4265_v31, %v891_v25  ;;  %1076 = vadd.xlane.f32.xlu0 %v1075_v6  ;;  %3676 = vpow2.f32 %v968_v16  ;;  %v1018_v14 = vsel %vm825_vm3, %v4375_v47, 0.0 }
 0x37f   :  { %v994_v8 = vmul.f32 1.442695, %v942_v10 }
 0x380   :  { %v4381_v3 = vpop.eup %3668  ;;  %v996_v1 = vmul.f32 1.442695, %v943_v32  ;;  %v840_v13 = vpop.xlane.xlu1 %839 }
 0x381   :  { %3678 = vpow2.f32 %v994_v8  ;;  %v926_v26 = vsub.f32 %v4261_v29, %v840_v13  ;;  %v843_v59 = vpop.xlane.xlu0 %842  ;;  %1019 = vadd.xlane.f32.xlu1 %v1018_v14  ;;  %v1027_v17 = vsel %vm825_vm3, %v4381_v3, 0.0 }
 0x382   :  { %v927_v31 = vsub.f32 %v4269_v33, %v843_v59  ;;  %1028 = vadd.xlane.f32.xlu0 %v1027_v17  ;;  %3680 = vpow2.f32 %v996_v1 }
 0x383   :  { %v962_v61 = vmul.f32 1.442695, %v926_v26 }
 0x384   :  { %v4389_v19 = vpop.eup %3670  ;;  %v964_v21 = vmul.f32 1.442695, %v927_v31  ;;  %v858_v23 = vpop.xlane.xlu1 %857 }
 0x385   :  { %3682 = vpow2.f32 %v962_v61  ;;  %v932_v34 = vsub.f32 %v4275_v38, %v858_v23  ;;  %v852_v16 = vpop.xlane.xlu0 %851  ;;  %v1069_v29 = vsel %vm825_vm3, %v4389_v19, 0.0  ;;  %v4394_v42 = vpop.eup %3672 }
 0x386   :  { %v930_v9 = vsub.f32 %v4279_v40, %v852_v16  ;;  %1070 = vadd.xlane.f32.xlu0 %v1069_v29  ;;  %3684 = vpow2.f32 %v964_v21  ;;  %v1021_v1 = vsel %vm825_vm3, %v4394_v42, 0.0 }
 0x387   :  { %v4397_v33 = vpop.eup %3674  ;;  %v974_v10 = vmul.f32 1.442695, %v932_v34 }
 0x388   :  { %v970_v25 = vmul.f32 1.442695, %v930_v9  ;;  %v870_v6 = vpop.xlane.xlu1 %869  ;;  %v1036_v32 = vsel %vm825_vm3, %v4397_v33, 0.0  ;;  %v4404_v13 = vpop.eup %3676 }
 0x389   :  { %3686 = vpow2.f32 %v974_v10  ;;  %v936_v38 = vsub.f32 %v4291_v49, %v870_v6  ;;  %v861_v8 = vpop.xlane.xlu0 %860  ;;  %1037 = vadd.xlane.f32.xlu1 %v1036_v32  ;;  %v1039_v21 = vsel %vm825_vm3, %v4404_v13, 0.0 }
 0x38a   :  { %v933_v40 = vsub.f32 %v4283_v43, %v861_v8  ;;  %1022 = vadd.xlane.f32.xlu0 %v1021_v1  ;;  %3688 = vpow2.f32 %v970_v25 }
 0x38b   :  { %v4407_v14 = vpop.eup %3678  ;;  %v982_v26 = vmul.f32 1.442695, %v936_v38 }
 0x38c   :  { %v976_v59 = vmul.f32 1.442695, %v933_v40  ;;  %v864_v17 = vpop.xlane.xlu1 %863  ;;  %v1078_v31 = vsel %vm825_vm3, %v4407_v14, 0.0  ;;  %v4414_v23 = vpop.eup %3680 }
 0x38d   :  { %v934_v49 = vsub.f32 %v4295_v45, %v864_v17  ;;  %v855_v61 = vpop.xlane.xlu0 %854  ;;  %1079 = vadd.xlane.f32.xlu1 %v1078_v31  ;;  %v1081_v6 = vsel %vm825_vm3, %v4414_v23, 0.0 }
 0x38e   :  { %3690 = vpow2.f32 %v976_v59  ;;  %v931_v43 = vsub.f32 %v4285_v44, %v855_v61  ;;  %1040 = vadd.xlane.f32.xlu0 %v1039_v21 }
 0x38f   :  { %v4417_v34 = vpop.eup %3682  ;;  %3692 = vpow2.f32 %v982_v26  ;;  %v978_v16 = vmul.f32 1.442695, %v934_v49 }
 0x390   :  { %v972_v29 = vmul.f32 1.442695, %v931_v43  ;;  %v906_v9 = vpop.xlane.xlu1 %905  ;;  %v1030_v45 = vsel %vm825_vm3, %v4417_v34, 0.0  ;;  %v4426_v32 = vpop.eup %3684 }
 0x391   :  { %v948_v10 = vsub.f32 %v4307_v20, %v906_v9  ;;  %v4422_v25 = vpop.xlane.xlu0 %896  ;;  %1031 = vadd.xlane.f32.xlu1 %v1030_v45  ;;  %v1033_v59 = vsel %vm825_vm3, %v4426_v32, 0.0 }
 0x392   :  { %3694 = vpow2.f32 %v972_v29  ;;  %1082 = vadd.xlane.f32.xlu0 %v1081_v6 }
 0x393   :  { %v4428_v44 = vpop.eup %3686  ;;  %3696 = vpow2.f32 %v978_v16  ;;  %v1006_v38 = vmul.f32 1.442695, %v948_v10 }
 0x394   :  { %v900_v8 = vpop.xlane.xlu1 %899  ;;  %v1048_v1 = vsel %vm825_vm3, %v4428_v44, 0.0  ;;  %v4432_v40 = vpop.eup %3688 }
 0x395   :  { %v946_v20 = vsub.f32 %v4311_v22, %v900_v8  ;;  %v873_v26 = vpop.xlane.xlu0 %872  ;;  %1049 = vadd.xlane.f32.xlu1 %v1048_v1  ;;  %3698 = vpow2.f32 %v1006_v38  ;;  %v1042_v21 = vsel %vm825_vm3, %v4432_v40, 0.0 }
 0x396   :  { %v937_v17 = vsub.f32 %v4299_v51, %v873_v26  ;;  %1034 = vadd.xlane.f32.xlu0 %v1033_v59 }
 0x397   :  { %v1002_v31 = vmul.f32 1.442695, %v946_v20 }
 0x398   :  { %v4438_v49 = vpop.eup %3690  ;;  %v984_v61 = vmul.f32 1.442695, %v937_v17 }
 0x399   :  { %v4442_v43 = vpop.eup %3692  ;;  %v867_v16 = vpop.xlane.xlu0 %866  ;;  %1043 = vadd.xlane.f32.xlu1 %v1042_v21  ;;  %v1051_v22 = vsel %vm825_vm3, %v4438_v49, 0.0 }
 0x39a   :  { %3700 = vpow2.f32 %v984_v61  ;;  %v935_v29 = vsub.f32 %v4301_v12, %v867_v16  ;;  %1052 = vadd.xlane.f32.xlu0 %v1051_v22  ;;  %v1060_v45 = vsel %vm825_vm3, %v4442_v43, 0.0 }
 0x39b   :  { %3702 = vpow2.f32 %v1002_v31 }
 0x39c   :  { %v4447_v51 = vpop.eup %3694  ;;  %v980_v9 = vmul.f32 1.442695, %v935_v29 }
 0x39d   :  { %v4451_v10 = vpop.eup %3696  ;;  %v909_v6 = vpop.xlane.xlu0 %908  ;;  %1061 = vadd.xlane.f32.xlu1 %v1060_v45  ;;  %v1045_v38 = vsel %vm825_vm3, %v4447_v51, 0.0 }
 0x39e   :  { %3704 = vpow2.f32 %v980_v9  ;;  %v949_v8 = vsub.f32 %v4315_v27, %v909_v6  ;;  %1046 = vadd.xlane.f32.xlu0 %v1045_v38  ;;  %v1054_v1 = vsel %vm825_vm3, %v4451_v10, 0.0 }
 0x39f   :  { %v4458_v20 = vpop.eup %3698 }
 0x3a0   :  { %v1008_v12 = vmul.f32 1.442695, %v949_v8  ;;  %v1096_v61 = vsel %vm825_vm3, %v4458_v20, 0.0  ;;  %v157_v8 = vld [vmem:[%s5413_s4 + $0x40] sm:$0xff] }
 0x3a1   :  { %v903_v26 = vpop.xlane.xlu0 %902  ;;  %1055 = vadd.xlane.f32.xlu1 %v1054_v1  ;;  %v918_v1 = vpop.xlane.xlu1 %917 }
 0x3a2   :  { %3706 = vpow2.f32 %v1008_v12  ;;  %v947_v59 = vsub.f32 %v4317_v30, %v903_v26  ;;  %v5428_v30 = vmov 0.0   ;;  %v158_v12 = vld [vmem:[%s5413_s4 + $0x48] sm:$0xff]  ;;  %v944_v26 = vsub.f32 %v4251_v24, %v4358_v11 }
 0x3a3   :  { %3263 = vmatprep.subr.bf16.mxu0 %v5428_v30  ;;  %3275 = vmatprep.subr.bf16.mxu1 %v5428_v30 }
 0x3a4   :  { %v4461_v17 = vpop.eup %3700  ;;  %v1004_v31 = vmul.f32 1.442695, %v947_v59  ;;  %3271 = vmatprep.mubr.msk.bf16.mxu0 %vm3976_vm4, %v5428_v30  ;;  %3283 = vmatprep.mubr.msk.bf16.mxu1 %vm3976_vm4, %v5428_v30  ;;  %v998_v59 = vmul.f32 1.442695, %v944_v26 }
 0x3a5   :  { %v4465_v21 = vpop.eup %3702  ;;  %1097 = vadd.xlane.f32.xlu1 %v1096_v61  ;;  %v1063_v27 = vsel %vm825_vm3, %v4461_v17, 0.0  ;;  %v921_v61 = vpop.xlane.xlu0 %920 }
 0x3a6   :  { %3708 = vpow2.f32 %v1004_v31  ;;  %1064 = vadd.xlane.f32.xlu0 %v1063_v27  ;;  %v1090_v22 = vsel %vm825_vm3, %v4465_v21, 0.0  ;;  %v952_v31 = vsub.f32 %v4323_v39, %v918_v1  ;;  %v912_v27 = vpop.xlane.xlu1 %911  ;;  %v953_v24 = vsub.f32 %v4331_v50, %v921_v61  ;;  %v159_v61 = vld [vmem:[%s5413_s4 + $0x50] sm:$0xff] }
 0x3a7   :  { %3710 = vpow2.f32 %v998_v59 }
 0x3a8   :  { %v4469_v16 = vpop.eup %3704 }
 0x3a9   :  { %1091 = vadd.xlane.f32.xlu1 %v1090_v22  ;;  %v1057_v29 = vsel %vm825_vm3, %v4469_v16, 0.0  ;;  %v1014_v22 = vmul.f32 1.442695, %v952_v31 }
 0x3aa   :  { %1058 = vadd.xlane.f32.xlu0 %v1057_v29  ;;  %v950_v29 = vsub.f32 %v4327_v46, %v912_v27 }
 0x3ab   :  { %3712 = vpow2.f32 %v1014_v22  ;;  %v160_v22 = vld [vmem:[%s5413_s4 + $0x58] sm:$0xff] }
 0x3ac   :  { %v4477_v9 = vpop.eup %3706 }
 0x3ad   :  { %v1099_v45 = vsel %vm825_vm3, %v4477_v9, 0.0 }
 0x3ae   :  { %1100 = vadd.xlane.f32.xlu0 %v1099_v45  ;;  %v945_v45 = vsub.f32 %v4259_v28, %v4422_v25 }
 0x3b0   :  { %v4481_v6 = vpop.eup %3708  ;;  %v1000_v30 = vmul.f32 1.442695, %v945_v45 }
 0x3b1   :  { %v1093_v38 = vsel %vm825_vm3, %v4481_v6, 0.0  ;;  %v4503_v11 = vpop.eup %3710 }
 0x3b2   :  { %1094 = vadd.xlane.f32.xlu0 %v1093_v38  ;;  %v915_v38 = vpop.xlane.xlu0 %914  ;;  %v1084_v46 = vsel %vm825_vm3, %v4503_v11, 0.0 }
 0x3b3   :  { %v951_v57 = vsub.f32 %v4333_v48, %v915_v38 }
 0x3b5   :  { %v1012_v39 = vmul.f32 1.442695, %v951_v57  ;;  %v4507_v1 = vpop.eup %3712 }
 0x3b6   :  { %v1108_v28 = vsel %vm825_vm3, %v4507_v1, 0.0 }
 0x3ba   :  { %203 = vperm.xlu1 %3463, %v157_v8   ;;  %v1010_v8 = vmul.f32 1.442695, %v950_v29 }
 0x3bc   :  { %3714 = vpow2.f32 %v1010_v8 }
 0x3bd   :  { %3716 = vpow2.f32 %v1000_v30 }
 0x3be   :  { %3718 = vpow2.f32 %v1012_v39 }
 0x3c6   :  { %v4511_v48 = vpop.eup %3714 }
 0x3c7   :  { %v4513_v25 = vpop.eup %3716  ;;  %v1102_v57 = vsel %vm825_vm3, %v4511_v48, 0.0 }
 0x3c8   :  { %208 = vperm.xlu0 %3462, %v158_v12   ;;  %v1016_v12 = vmul.f32 1.442695, %v953_v24  ;;  %v1087_v50 = vsel %vm825_vm3, %v4513_v25, 0.0  ;;  %v4519_v30 = vpop.eup %3718 }
 0x3c9   :  { %v1105_v26 = vsel %vm825_vm3, %v4519_v30, 0.0 }
 0x3ca   :  { %3720 = vpow2.f32 %v1016_v12 }
 0x3d4   :  { %v4523_v59 = vpop.eup %3720 }
 0x3d5   :  { %v1111_v31 = vsel %vm825_vm3, %v4523_v59, 0.0 }
 0x3de   :  { %1085 = vadd.xlane.f32.xlu1 %v1084_v46 }
 0x3e2   :  { %1109 = vadd.xlane.f32.xlu1 %v1108_v28 }
 0x3e6   :  { %1103 = vadd.xlane.f32.xlu1 %v1102_v57 }
 0x3e7   :  { %1088 = vadd.xlane.f32.xlu0 %v1087_v50 }
 0x3eb   :  { %1106 = vadd.xlane.f32.xlu0 %v1105_v26 }
 0x3ef   :  { %1112 = vadd.xlane.f32.xlu0 %v1111_v31 }
 0x3f7   :  { %213 = vperm.xlu1 %3463, %v159_v61  }
 0x3fb   :  { %1431 = vrot.lane.b32.xlu1 %v4119_v37, %s3977_s13 }
 0x3ff   :  { %1514 = vrot.lane.b32.xlu1 %v4128_v41, %s3977_s13 }
 0x402   :  { %v4534_v27 = vpop.xlane.xlu1 %1073 }
 0x403   :  { %1680 = vrot.lane.b32.xlu1 %v4156_v4, %s3977_s13 }
 0x405   :  { %218 = vperm.xlu0 %3462, %v160_v22  }
 0x406   :  { %v1026_v29 = vpop.xlane.xlu1 %1025 }
 0x409   :  { %1597 = vrot.lane.b32.xlu0 %v4117_v35, %s3977_s13 }
 0x40a   :  { %v1068_v37 = vpop.xlane.xlu1 %1067 }
 0x40b   :  { %v4543_v45 = vpop.xlane.xlu0 %1076 }
 0x40e   :  { %v1020_v8 = vpop.xlane.xlu1 %1019 }
 0x40f   :  { %v1029_v38 = vpop.xlane.xlu0 %1028  ;;  %3722 = vrcp.f32 %v1020_v8 }
 0x413   :  { %v1071_v41 = vpop.xlane.xlu0 %1070 }
 0x416   :  { %v1038_v24 = vpop.xlane.xlu1 %1037 }
 0x417   :  { %v1023_v39 = vpop.xlane.xlu0 %1022 }
 0x418   :  { %3724 = vrcp.f32 %v1023_v39 }
 0x419   :  { %3726 = vrcp.f32 %v1029_v38  ;;  %v3723_v57 = vpop.eup %3722 }
 0x41a   :  { %v4545_v12 = vpop.xlane.xlu1 %1079  ;;  %3728 = vrcp.f32 %v1026_v29  ;;  %v1146_v31 = vmul.f32 %v3723_v57, %v4375_v47 }
 0x41b   :  { %v1041_v46 = vpop.xlane.xlu0 %1040 }
 0x41e   :  { %v1032_v4 = vpop.xlane.xlu1 %1031 }
 0x41f   :  { %v4547_v28 = vpop.xlane.xlu0 %1082  ;;  %3730 = vrcp.f32 %v1032_v4 }
 0x422   :  { %v3725_v35 = vpop.eup %3724  ;;  %v1050_v50 = vpop.xlane.xlu1 %1049 }
 0x423   :  { %v1035_v26 = vpop.xlane.xlu0 %1034  ;;  %v1147_v61 = vmul.f32 %v3725_v35, %v4394_v42  ;;  %v3727_v22 = vpop.eup %3726 }
 0x424   :  { %3732 = vrcp.f32 %v1035_v26  ;;  %v3729_v38 = vpop.eup %3728  ;;  %v1149_v5 = vmul.f32 %v3727_v22, %v4381_v3 }
 0x425   :  { %v1178_v8 = vpack.c.bf16 %v1147_v61, %v1146_v31  ;;  %3734 = vrcp.f32 %v1041_v46  ;;  %v1148_v4 = vmul.f32 %v3729_v38, %v4362_v63 }
 0x426   :  { %v1044_v39 = vpop.xlane.xlu1 %1043 }
 0x427   :  { %v1053_v7 = vpop.xlane.xlu0 %1052  ;;  %v1198_v29 = vsel %vm825_vm3, %v1178_v8, 0  ;;  %3736 = vrcp.f32 %v1044_v39  ;;  %v1179_v57 = vpack.c.bf16 %v1149_v5, %v1148_v4 }
 0x428   :  { %3264 = vmatpush3.bf16.xpose.msra.mxu0 %v1198_v29  ;;  %3738 = vrcp.f32 %v1038_v24 }
 0x429   :  { %3265 = vmatprep.subr.bf16.mxu0 %v5444_v54  ;;  %v3731_v35 = vpop.eup %3730  ;;  %v1201_v61 = vsel %vm825_vm3, %v1179_v57, 0 }
 0x42a   :  { %v1062_v47 = vpop.xlane.xlu1 %1061  ;;  %v1150_v63 = vmul.f32 %v3731_v35, %v4417_v34 }
 0x42b   :  { %v1047_v42 = vpop.xlane.xlu0 %1046 }
 0x42c   :  { %3740 = vrcp.f32 %v1047_v42 }
 0x42d   :  { %3742 = vrcp.f32 %v1053_v7 }
 0x42e   :  { %v3733_v26 = vpop.eup %3732  ;;  %v1056_v31 = vpop.xlane.xlu1 %1055  ;;  %3744 = vrcp.f32 %v1050_v50 }
 0x42f   :  { %v1151_v3 = vmul.f32 %v3733_v26, %v4426_v32  ;;  %3746 = vrcp.f32 %v1071_v41  ;;  %v3735_v24 = vpop.eup %3734 }
 0x430   :  { %3266 = vmatpush3.bf16.xpose.msra.mxu0 %v1201_v61  ;;  %3748 = vrcp.f32 %v1068_v37  ;;  %v1153_v39 = vmul.f32 %v3735_v24, %v4404_v13 }
 0x431   :  { %3267 = vmatprep.subr.bf16.mxu0 %v5444_v54  ;;  %v1180_v22 = vpack.c.bf16 %v1151_v3, %v1150_v63  ;;  %v3737_v8 = vpop.eup %3736  ;;  %3750 = vrcp.f32 %v1056_v31 }
 0x432   :  { %v4559_v46 = vpop.xlane.xlu1 %1097  ;;  %v3739_v7 = vpop.eup %3738  ;;  %v1154_v29 = vmul.f32 %v3737_v8, %v4432_v40 }
 0x433   :  { %v1065_v5 = vpop.xlane.xlu0 %1064  ;;  %v1204_v50 = vsel %vm825_vm3, %v1180_v22, 0  ;;  %v1152_v37 = vmul.f32 %v3739_v7, %v4397_v33 }
 0x435   :  { %v1181_v35 = vpack.c.bf16 %v1153_v39, %v1152_v37 }
 0x436   :  { %v3741_v38 = vpop.eup %3740  ;;  %v1092_v4 = vpop.xlane.xlu1 %1091 }
 0x437   :  { %v1059_v32 = vpop.xlane.xlu0 %1058  ;;  %v1155_v34 = vmul.f32 %v3741_v38, %v4447_v51  ;;  %v3743_v41 = vpop.eup %3742  ;;  %v1207_v3 = vsel %vm825_vm3, %v1181_v35, 0 }
 0x438   :  { %3752 = vrcp.f32 %v1059_v32  ;;  %3268 = vmatpush3.bf16.xpose.msra.mxu0 %v1204_v50  ;;  %v3745_v57 = vpop.eup %3744  ;;  %v1157_v26 = vmul.f32 %v3743_v41, %v4438_v49 }
 0x439   :  { %v1182_v42 = vpack.c.bf16 %v1155_v34, %v1154_v29  ;;  %3269 = vmatprep.subr.bf16.mxu0 %v5444_v54  ;;  %3754 = vrcp.f32 %v4543_v45  ;;  %v3747_v40 = vpop.eup %3746  ;;  %v1156_v31 = vmul.f32 %v3745_v57, %v4428_v44 }
 0x43a   :  { %3756 = vrcp.f32 %v4534_v27  ;;  %v3749_v61 = vpop.eup %3748  ;;  %v204_v33 = vpop.permute.xlu1 %203  ;;  %v1163_v63 = vmul.f32 %v3747_v40, %v4389_v19 }
 0x43b   :  { %v1253_v13 = vsel %vm825_vm3, %v1182_v42, 0  ;;  %v1101_v51 = vpop.xlane.xlu0 %1100  ;;  %3758 = vrcp.f32 %v1065_v5  ;;  %v1183_v45 = vpack.c.bf16 %v1157_v26, %v1156_v31  ;;  %v3751_v49 = vpop.eup %3750  ;;  %v337_v24 = vadd.f32 %v4183_v53, %v204_v33 }
 0x43c   :  { %3276 = vmatpush3.bf16.xpose.msra.mxu1 %v1253_v13  ;;  %3760 = vrcp.f32 %v1062_v47  ;;  %v1162_v27 = vmul.f32 %v3749_v61, %v4367_v18  ;;  %v1158_v53 = vmul.f32 %v3751_v49, %v4451_v10 }
 0x43d   :  { %3277 = vmatprep.subr.bf16.mxu1 %v5444_v54  ;;  %3762 = vrcp.f32 %v4547_v28  ;;  %v1256_v5 = vsel %vm825_vm3, %v1183_v45, 0  ;;  %v4582_v19 = vpack.c.bf16 %v337_v24, %v337_v24 }
 0x43e   :  { %v1186_v8 = vpack.c.bf16 %v1163_v63, %v1162_v27  ;;  %3764 = vrcp.f32 %v4545_v12 }
 0x43f   :  { %v1095_v44 = vpop.xlane.xlu0 %1094 }
 0x440   :  { %3270 = vmatpush3.bf16.xpose.msra.mxu0 %v1207_v3  ;;  %3766 = vrcp.f32 %v1095_v44  ;;  %v1308_v28 = vsel %vm825_vm3, %v1186_v8, 0 }
 0x441   :  { %3287 = vmatprep.subr.bf16.mxu0 %v5444_v54  ;;  %3768 = vrcp.f32 %v1092_v4 }
 0x442   :  { %v3753_v22 = vpop.eup %3752  ;;  %3770 = vrcp.f32 %v1101_v51 }
 0x443   :  { %v1159_v7 = vmul.f32 %v3753_v22, %v4469_v16  ;;  %v3755_v38 = vpop.eup %3754  ;;  %3772 = vrcp.f32 %v4559_v46 }
 0x444   :  { %3278 = vmatpush3.bf16.xpose.msra.mxu1 %v1256_v5  ;;  %v3757_v18 = vpop.eup %3756  ;;  %v1165_v16 = vmul.f32 %v3755_v38, %v4371_v36 }
 0x445   :  { %3279 = vmatprep.subr.bf16.mxu1 %v5444_v54  ;;  %v1184_v47 = vpack.c.bf16 %v1159_v7, %v1158_v53  ;;  %v3759_v39 = vpop.eup %3758  ;;  %v1164_v10 = vmul.f32 %v3757_v18, %v4355_v15 }
 0x446   :  { %v3761_v12 = vpop.eup %3760  ;;  %v1161_v29 = vmul.f32 %v3759_v39, %v4461_v17 }
 0x447   :  { %3272 = vmatmul.mubr.msk.bf16.vlgmr.msra.gmra.mrb[20].mxu0 %vm825_vm3, %v4582_v19  ;;  %v1259_v32 = vsel %vm825_vm3, %v1184_v47, 0  ;;  %v1187_v50 = vpack.c.bf16 %v1165_v16, %v1164_v10  ;;  %v3763_v34 = vpop.eup %3762  ;;  %v1160_v36 = vmul.f32 %v3761_v12, %v4442_v43  ;;  %v209_v13 = vpop.permute.xlu0 %208 }
 0x448   :  { %3288 = vmatpush3.bf16.xpose.msra.mxu0 %v1308_v28  ;;  %3295 = vmatprep.mubr.msk.bf16.mxu0 %vm3976_vm4, %v5444_v54  ;;  %v3765_v41 = vpop.eup %3764  ;;  %v1167_v37 = vmul.f32 %v3763_v34, %v4414_v23  ;;  %v340_v40 = vadd.f32 %v4187_v55, %v209_v13  ;;  %v5445_v13 = vld [vmem:[#allocation5_spill] sm:$0xff] }
 0x449   :  { %3289 = vmatprep.subr.bf16.mxu0 %v5444_v54  ;;  %v1311_v4 = vsel %vm825_vm3, %v1187_v50, 0  ;;  %v1185_v42 = vpack.c.bf16 %v1161_v29, %v1160_v36  ;;  %v1166_v17 = vmul.f32 %v3765_v41, %v4407_v14 }
 0x44a   :  { %v3767_v15 = vpop.eup %3766  ;;  %v4609_v14 = vpack.c.bf16 %v340_v40, %v340_v40 }
 0x44b   :  { %v3769_v57 = vpop.eup %3768  ;;  %v1262_v35 = vsel %vm825_vm3, %v1185_v42, 0  ;;  %v1188_v43 = vpack.c.bf16 %v1167_v37, %v1166_v17  ;;  %v1171_v26 = vmul.f32 %v3767_v15, %v4481_v6  ;;  %v3522_v42 = vunpack.i.l.bf16 %v4201_v62 }
 0x44c   :  { %3280 = vmatpush3.bf16.xpose.msra.mxu1 %v1259_v32  ;;  %v1170_v23 = vmul.f32 %v3769_v57, %v4465_v21  ;;  %v3771_v31 = vpop.eup %3770  ;;  %v3512_v32 = vunpack.i.l.bf16 %v4193_v58  ;;  %v3527_v37 = vunpack.i.l.bf16 %v4205_v0 }
 0x44d   :  { %3281 = vmatprep.subr.bf16.mxu1 %v5444_v54  ;;  %v1314_v46 = vsel %vm825_vm3, %v1188_v43, 0  ;;  %v3773_v61 = vpop.eup %3772  ;;  %v1173_v55 = vmul.f32 %v3771_v31, %v4477_v9  ;;  %v3510_v43 = vunpack.i.h.bf16 %v4189_v56  ;;  %v5447_v31 = vld [vmem:[#allocation14_spill] sm:$0xff] }
 0x44e   :  { %v1190_v51 = vpack.c.bf16 %v1171_v26, %v1170_v23  ;;  %v1172_v21 = vmul.f32 %v3773_v61, %v4458_v20  ;;  %v3515_v26 = vunpack.i.h.bf16 %v4193_v58  ;;  %v3542_v61 = vunpack.i.l.bf16 %v5447_v31 }
 0x450   :  { %3290 = vmatpush3.bf16.xpose.msra.mxu0 %v1311_v4  ;;  %v1363_v6 = vsel %vm825_vm3, %v1190_v51, 0  ;;  %v1191_v33 = vpack.c.bf16 %v1173_v55, %v1172_v21  ;;  %v5448_v55 = vld [vmem:[#allocation6_spill] sm:$0xff]  ;;  %v5449_v21 = vld [vmem:[#allocation7_spill] sm:$0xff] }
 0x451   :  { %3291 = vmatprep.subr.bf16.mxu0 %v5444_v54  ;;  %v3594_v58 = vunpack.i.l.bf16 %v5449_v21 }
 0x452   :  { %v1366_v3 = vsel %vm825_vm3, %v1191_v33, 0  ;;  %v1418_v33 = vpack.c.bf16 %v3515_v26, %v3510_v43 }
 0x454   :  { %3282 = vmatpush3.bf16.xpose.msra.mxu1 %v1262_v35 }
 0x455   :  { %3299 = vmatprep.subr.bf16.mxu1 %v5444_v54 }
 0x458   :  { %3292 = vmatpush3.bf16.xpose.msra.mxu0 %v1314_v46  ;;  %v5446_v46 = vld [vmem:[#allocation12_spill] sm:$0xff] }
 0x459   :  { %3293 = vmatprep.subr.bf16.mxu0 %v5444_v54  ;;  %v3537_v51 = vunpack.i.l.bf16 %v5446_v46 }
 0x45b   :  { %3284 = vmatmul.mubr.msk.bf16.vlgmr.msra.gmra.mrb[24].mxu1 %vm825_vm3, %v4609_v14 }
 0x45c   :  { %3300 = vmatpush3.bf16.xpose.msra.mxu1 %v1363_v6  ;;  %3307 = vmatprep.mubr.msk.bf16.mxu1 %vm3976_vm4, %v5444_v54 }
 0x45d   :  { %3301 = vmatprep.subr.bf16.mxu1 %v5444_v54 }
 0x464   :  { %3302 = vmatpush3.bf16.xpose.msra.mxu1 %v1366_v3 }
 0x465   :  { %3303 = vmatprep.subr.bf16.mxu1 %v5444_v54 }
 0x46b   :  { %v1086_v45 = vpop.xlane.xlu1 %1085 }
 0x46c   :  { %3774 = vrcp.f32 %v1086_v45 }
 0x46f   :  { %v1110_v63 = vpop.xlane.xlu1 %1109 }
 0x473   :  { %v1104_v49 = vpop.xlane.xlu1 %1103 }
 0x474   :  { %v1089_v24 = vpop.xlane.xlu0 %1088 }
 0x475   :  { %3776 = vrcp.f32 %v1089_v24  ;;  %v1417_v24 = vpack.c.bf16 %v3542_v61, %v3537_v51 }
 0x476   :  { %3778 = vrcp.f32 %v1104_v49  ;;  %v3775_v22 = vpop.eup %3774  ;;  %v3525_v49 = vunpack.i.h.bf16 %v4201_v62  ;;  %v5453_v62 = vld [vmem:[#allocation11_spill] sm:$0xff] }
 0x477   :  { %v214_v44 = vpop.permute.xlu1 %213  ;;  %v1168_v5 = vmul.f32 %v3775_v22, %v4503_v11 }
 0x478   :  { %v1107_v9 = vpop.xlane.xlu0 %1106  ;;  %v345_v10 = vadd.f32 %v4181_v52, %v214_v44 }
 0x479   :  { %3780 = vrcp.f32 %v1107_v9  ;;  %v3530_v9 = vunpack.i.h.bf16 %v4205_v0 }
 0x47a   :  { %3782 = vrcp.f32 %v1110_v63  ;;  %v3520_v63 = vunpack.i.h.bf16 %v4197_v60 }
 0x47b   :  { %v1432_v16 = vpop.permute.xlu1 %1431 }
 0x47c   :  { %v1113_v27 = vpop.xlane.xlu0 %1112  ;;  %v1446_v36 = vsel %vm516_vm1, %v1432_v16, 0 }
 0x47d   :  { %3784 = vrcp.f32 %v1113_v27  ;;  %v3535_v27 = vunpack.i.h.bf16 %v4209_v2 }
 0x47f   :  { %v3777_v20 = vpop.eup %3776  ;;  %v1515_v17 = vpop.permute.xlu1 %1514 }
 0x480   :  { %v1169_v8 = vmul.f32 %v3777_v20, %v4513_v25  ;;  %v3779_v7 = vpop.eup %3778  ;;  %v3507_v25 = vunpack.i.l.bf16 %v4189_v56  ;;  %v3589_v56 = vunpack.i.l.bf16 %v5448_v55  ;;  %v1529_v3 = vsel %vm516_vm1, %v1515_v17, 0  ;;  %v5450_v20 = vld [vmem:[#allocation8_spill] sm:$0xff] }
 0x481   :  { %v1174_v28 = vmul.f32 %v3779_v7, %v4511_v48  ;;  %v3599_v44 = vunpack.i.l.bf16 %v5450_v20 }
 0x482   :  { %v1189_v38 = vpack.c.bf16 %v1169_v8, %v1168_v5  ;;  %v1414_v34 = vpack.c.bf16 %v3512_v32, %v3507_v25  ;;  %v1422_v22 = vpack.c.bf16 %v3594_v58, %v3589_v56  ;;  %v1419_v5 = vpack.c.bf16 %v3525_v49, %v3520_v63  ;;  %v5451_v8 = vld [vmem:[#allocation9_spill] sm:$0xff]  ;;  %v5455_v25 = vld [vmem:[#allocation15_spill] sm:$0xff] }
 0x483   :  { %v3781_v53 = vpop.eup %3780  ;;  %v1681_v45 = vpop.permute.xlu1 %1680  ;;  %v3604_v7 = vunpack.i.l.bf16 %v5451_v8  ;;  %v3624_v32 = vunpack.i.l.bf16 %v5455_v25 }
 0x484   :  { %v1317_v18 = vsel %vm825_vm3, %v1189_v38, 0  ;;  %v1175_v47 = vmul.f32 %v3781_v53, %v4519_v30  ;;  %v3783_v39 = vpop.eup %3782  ;;  %v219_v50 = vpop.permute.xlu0 %218  ;;  %v4633_v30 = vpack.c.bf16 %v345_v10, %v345_v10  ;;  %v3614_v53 = vunpack.i.l.bf16 %v5453_v62 }
 0x485   :  { %3294 = vmatpush3.bf16.xpose.msra.mxu0 %v1317_v18  ;;  %v1176_v52 = vmul.f32 %v3783_v39, %v4507_v1  ;;  %v3532_v1 = vunpack.i.l.bf16 %v4209_v2  ;;  %v348_v35 = vadd.f32 %v5445_v13, %v219_v50  ;;  %v1420_v18 = vpack.c.bf16 %v3535_v27, %v3530_v9 }
 0x486   :  { %3451 = vmatprep.subr.msk.bf16.mxu0 %vm516_vm1, %v1432_v16  ;;  %v1192_v12 = vpack.c.bf16 %v1175_v47, %v1174_v28  ;;  %v1695_v28 = vsel %vm516_vm1, %v1681_v45, 0  ;;  %v1423_v0 = vpack.c.bf16 %v3604_v7, %v3599_v44  ;;  %v3540_v2 = vunpack.i.h.bf16 %v5446_v46 }
 0x487   :  { %v3785_v11 = vpop.eup %3784  ;;  %v1416_v40 = vpack.c.bf16 %v3532_v1, %v3527_v37  ;;  %v4656_v6 = vpack.c.bf16 %v348_v35, %v348_v35  ;;  %v3545_v47 = vunpack.i.h.bf16 %v5447_v31  ;;  %v3592_v16 = vunpack.i.h.bf16 %v5448_v55 }
 0x488   :  { %v1369_v29 = vsel %vm825_vm3, %v1192_v12, 0  ;;  %v1177_v48 = vmul.f32 %v3785_v11, %v4523_v59  ;;  %v1598_v4 = vpop.permute.xlu0 %1597  ;;  %v3517_v59 = vunpack.i.l.bf16 %v4197_v60  ;;  %v5452_v60 = vld [vmem:[#allocation10_spill] sm:$0xff]  ;;  %v3597_v39 = vunpack.i.h.bf16 %v5449_v21  ;;  %v5454_v12 = vld [vmem:[#allocation13_spill] sm:$0xff] }
 0x489   :  { %3304 = vmatpush3.bf16.xpose.msra.mxu1 %v1369_v29  ;;  %v1612_v23 = vsel %vm516_vm1, %v1598_v4, 0  ;;  %v3609_v38 = vunpack.i.l.bf16 %v5452_v60  ;;  %v3619_v11 = vunpack.i.l.bf16 %v5454_v12  ;;  %v1421_v50 = vpack.c.bf16 %v3545_v47, %v3540_v2 }
 0x48a   :  { %3305 = vmatprep.subr.bf16.mxu1 %v5444_v54  ;;  %v1193_v41 = vpack.c.bf16 %v1177_v48, %v1176_v52  ;;  %v1415_v57 = vpack.c.bf16 %v3522_v42, %v3517_v59  ;;  %v1426_v29 = vpack.c.bf16 %v3597_v39, %v3592_v16  ;;  %v3602_v48 = vunpack.i.h.bf16 %v5450_v20 }
 0x48b   :  { %v1424_v10 = vpack.c.bf16 %v3614_v53, %v3609_v38  ;;  %v3607_v52 = vunpack.i.h.bf16 %v5451_v8  ;;  %v3622_v42 = vunpack.i.h.bf16 %v5454_v12  ;;  %v3627_v37 = vunpack.i.h.bf16 %v5455_v25 }
 0x48c   :  { %3296 = vmatmul.mubr.msk.bf16.vlgmr.msra.gmra.mrb[24].mxu0 %vm825_vm3, %v4633_v30  ;;  %v1372_v15 = vsel %vm825_vm3, %v1193_v41, 0  ;;  %v3617_v41 = vunpack.i.h.bf16 %v5453_v62 }
 0x48d   :  { %3312 = vmatpush3.bf16.msra.mxu0 %v1446_v36  ;;  %3313 = vmatprep.mubr.msk.bf16.mxu0 %vm503_vm2, %v1414_v34  ;;  %v1425_v34 = vpack.c.bf16 %v3624_v32, %v3619_v11  ;;  %v3612_v36 = vunpack.i.h.bf16 %v5452_v60  ;;  %v1429_v1 = vpack.c.bf16 %v3627_v37, %v3622_v42 }
 0x48e   :  { %3453 = vmatprep.subr.msk.bf16.mxu0 %vm516_vm1, %v1598_v4  ;;  %v1427_v4 = vpack.c.bf16 %v3607_v52, %v3602_v48 }
 0x48f   :  { %v1428_v59 = vpack.c.bf16 %v3617_v41, %v3612_v36 }
 0x491   :  { %3306 = vmatpush3.bf16.xpose.msra.mxu1 %v1372_v15 }
 0x492   :  { %3452 = vmatprep.subr.msk.bf16.mxu1 %vm516_vm1, %v1515_v17 }
 0x494   :  { %3314 = vmatmul.mubr.msk.bf16.vlgmr.msra.gmra.mrb[28].mxu0 %vm503_vm2, %v1415_v57 }
 0x495   :  { %3332 = vmatpush3.bf16.msra.mxu0 %v1612_v23  ;;  %3317 = vmatprep.mubr.msk.bf16.mxu0 %vm503_vm2, %v1416_v40 }
 0x496   :  { %3351 = vmatprep.subr.bf16.mxu0 %v5444_v54 }
 0x498   :  { %3308 = vmatmul.mubr.msk.bf16.vlgmr.msra.gmra.mrb[28].mxu1 %vm825_vm3, %v4656_v6 }
 0x499   :  { %3322 = vmatpush3.bf16.msra.mxu1 %v1529_v3  ;;  %3323 = vmatprep.mubr.msk.bf16.mxu1 %vm503_vm2, %v1418_v33 }
 0x49a   :  { %3454 = vmatprep.subr.msk.bf16.mxu1 %vm516_vm1, %v1681_v45 }
 0x49c   :  { %3318 = vmatmul.mubr.msk.bf16.gmra.mrb[32].mxu0 %vm503_vm2, %v1417_v24 }
 0x49d   :  { %3333 = vmatprep.mubr.msk.bf16.mxu0 %vm503_vm2, %v1422_v22 }
 0x4a0   :  { %3324 = vmatmul.mubr.msk.bf16.vlgmr.msra.gmra.mrb[32].mxu1 %vm503_vm2, %v1419_v5 }
 0x4a1   :  { %3342 = vmatpush3.bf16.msra.mxu1 %v1695_v28  ;;  %3327 = vmatprep.mubr.msk.bf16.mxu1 %vm503_vm2, %v1420_v18 }
 0x4a2   :  { %3363 = vmatprep.subr.bf16.mxu1 %v5444_v54 }
 0x4a4   :  { %3334 = vmatmul.mubr.msk.bf16.vlgmr.msra.gmra.mrb[36].mxu0 %vm503_vm2, %v1423_v0 }
 0x4a5   :  { %3337 = vmatprep.mubr.msk.bf16.mxu0 %vm503_vm2, %v1424_v10 }
 0x4a8   :  { %3328 = vmatmul.mubr.msk.bf16.gmra.mrb[36].mxu1 %vm503_vm2, %v1421_v50 }
 0x4a9   :  { %3343 = vmatprep.mubr.msk.bf16.mxu1 %vm503_vm2, %v1426_v29 }
 0x4ac   :  { %3338 = vmatmul.mubr.msk.bf16.gmra.mrb[40].mxu0 %vm503_vm2, %v1425_v34 }
 0x4ad   :  { %3359 = vmatprep.mubr.msk.bf16.mxu0 %vm3976_vm4, %v5444_v54 }
 0x4b0   :  { %3344 = vmatmul.mubr.msk.bf16.vlgmr.msra.gmra.mrb[40].mxu1 %vm503_vm2, %v1427_v4 }
 0x4b1   :  { %3347 = vmatprep.mubr.msk.bf16.mxu1 %vm503_vm2, %v1428_v59 }
 0x4b8   :  { %3348 = vmatmul.mubr.msk.bf16.gmra.mrb[44].mxu1 %vm503_vm2, %v1429_v1 }
 0x4b9   :  { %3371 = vmatprep.mubr.msk.bf16.mxu1 %vm3976_vm4, %v5444_v54 }
 0x51a   :  { %v4704_v15 = vpop.f32.mrb[20].mxu0 }
 0x51b   :  { %v3273_v17 = vpop.f32.mrb[21].mxu0 }
 0x51c   :  { %v1246_v57 = vpop.f32.mrb[22].mxu0 }
 0x51d   :  { %v3274_v13 = vpop.f32.mrb[23].mxu0 }
 0x52e   :  { %v4706_v35 = vpop.f32.mrb[24].mxu1 }
 0x52f   :  { %v3285_v43 = vpop.f32.mrb[25].mxu1 }
 0x530   :  { %v1301_v26 = vpop.f32.mrb[26].mxu1 }
 0x531   :  { %v3286_v40 = vpop.f32.mrb[27].mxu1 }
 0x55f   :  { %v4708_v23 = vpop.f32.mrb[24].mxu0 }
 0x560   :  { %v3297_v46 = vpop.f32.mrb[25].mxu0 }
 0x561   :  { %v1356_v51 = vpop.f32.mrb[26].mxu0 }
 0x562   :  { %v3298_v31 = vpop.f32.mrb[27].mxu0 }
 0x567   :  { %v4710_v61 = vpop.f32.mrb[28].mxu0 }
 0x568   :  { %v4712_v55 = vpop.f32.mrb[29].mxu0  ;;  %v1768_v56 = vsel %vm825_vm3, %v4710_v61, -inf }
 0x569   :  { %1769 = vmax.xlane.f32.xlu1 %v1768_v56  ;;  %v4716_v21 = vpop.f32.mrb[30].mxu0  ;;  %v1762_v58 = vsel %vm825_vm3, %v4712_v55, -inf }
 0x56a   :  { %1763 = vmax.xlane.f32.xlu0 %v1762_v58  ;;  %v4720_v33 = vpop.f32.mrb[31].mxu0  ;;  %v1771_v12 = vsel %vm825_vm3, %v4716_v21, -inf }
 0x56b   :  { %v4722_v3 = vpop.f32.mrb[28].mxu1  ;;  %v1765_v45 = vsel %vm825_vm3, %v4720_v33, -inf }
 0x56c   :  { %v3309_v63 = vpop.f32.mrb[29].mxu1 }
 0x56d   :  { %1766 = vmax.xlane.f32.xlu1 %v1765_v45  ;;  %v1411_v49 = vpop.f32.mrb[30].mxu1 }
 0x56e   :  { %v3310_v24 = vpop.f32.mrb[31].mxu1 }
 0x56f   :  { %v4726_v9 = vpop.f32.mrb[32].mxu0 }
 0x570   :  { %v4728_v27 = vpop.f32.mrb[33].mxu0  ;;  %v1780_v39 = vsel %vm825_vm3, %v4726_v9, -inf }
 0x571   :  { %v4730_v22 = vpop.f32.mrb[34].mxu0  ;;  %v1774_v18 = vsel %vm825_vm3, %v4728_v27, -inf }
 0x572   :  { %v4732_v20 = vpop.f32.mrb[35].mxu0  ;;  %v1783_v26 = vsel %vm825_vm3, %v4730_v22, -inf }
 0x573   :  { %v4734_v44 = vpop.f32.mrb[32].mxu1  ;;  %v1777_v59 = vsel %vm825_vm3, %v4732_v20, -inf }
 0x574   :  { %v4736_v5 = vpop.f32.mrb[33].mxu1  ;;  %v1792_v8 = vsel %vm825_vm3, %v4734_v44, -inf }
 0x575   :  { %1793 = vmax.xlane.f32.xlu1 %v1792_v8  ;;  %v4740_v7 = vpop.f32.mrb[34].mxu1  ;;  %v1786_v60 = vsel %vm825_vm3, %v4736_v5, -inf }
 0x576   :  { %1787 = vmax.xlane.f32.xlu0 %v1786_v60  ;;  %v4744_v38 = vpop.f32.mrb[35].mxu1  ;;  %v1795_v48 = vsel %vm825_vm3, %v4740_v7, -inf }
 0x577   :  { %v4746_v62 = vpop.f32.mrb[36].mxu0  ;;  %v1789_v0 = vsel %vm825_vm3, %v4744_v38, -inf }
 0x578   :  { %v4748_v53 = vpop.f32.mrb[37].mxu0  ;;  %v1816_v13 = vsel %vm825_vm3, %v4746_v62, -inf }
 0x579   :  { %1775 = vmax.xlane.f32.xlu1 %v1774_v18  ;;  %v4752_v28 = vpop.f32.mrb[38].mxu0  ;;  %v1810_v37 = vsel %vm825_vm3, %v4748_v53, -inf }
 0x57a   :  { %1790 = vmax.xlane.f32.xlu0 %v1789_v0  ;;  %v4756_v2 = vpop.f32.mrb[39].mxu0  ;;  %v1819_v49 = vsel %vm825_vm3, %v4752_v28, -inf }
 0x57b   :  { %v4758_v47 = vpop.f32.mrb[36].mxu1  ;;  %v1813_v56 = vsel %vm825_vm3, %v4756_v2, -inf }
 0x57c   :  { %v4760_v16 = vpop.f32.mrb[37].mxu1  ;;  %v1804_v41 = vsel %vm825_vm3, %v4758_v47, -inf }
 0x57d   :  { %1781 = vmax.xlane.f32.xlu1 %v1780_v39  ;;  %v4764_v10 = vpop.f32.mrb[38].mxu1  ;;  %v1798_v50 = vsel %vm825_vm3, %v4760_v16, -inf }
 0x57e   :  { %1772 = vmax.xlane.f32.xlu0 %v1771_v12  ;;  %v4768_v11 = vpop.f32.mrb[39].mxu1  ;;  %v1807_v51 = vsel %vm825_vm3, %v4764_v10, -inf }
 0x57f   :  { %v4770_v25 = vpop.f32.mrb[40].mxu0  ;;  %v1801_v1 = vsel %vm825_vm3, %v4768_v11, -inf }
 0x580   :  { %v4772_v32 = vpop.f32.mrb[41].mxu0  ;;  %v1828_v63 = vsel %vm825_vm3, %v4770_v25, -inf }
 0x581   :  { %1799 = vmax.xlane.f32.xlu1 %v1798_v50  ;;  %v4776_v29 = vpop.f32.mrb[42].mxu0  ;;  %v1822_v58 = vsel %vm825_vm3, %v4772_v32, -inf }
 0x582   :  { %1796 = vmax.xlane.f32.xlu0 %v1795_v48  ;;  %v4780_v52 = vpop.f32.mrb[43].mxu0  ;;  %v1831_v39 = vsel %vm825_vm3, %v4776_v29, -inf }
 0x583   :  { %v4782_v34 = vpop.f32.mrb[40].mxu1  ;;  %v1825_v18 = vsel %vm825_vm3, %v4780_v52, -inf }
 0x584   :  { %v4784_v36 = vpop.f32.mrb[41].mxu1  ;;  %v1840_v31 = vsel %vm825_vm3, %v4782_v34, -inf }
 0x585   :  { %1805 = vmax.xlane.f32.xlu1 %v1804_v41  ;;  %v4788_v4 = vpop.f32.mrb[42].mxu1  ;;  %v1834_v46 = vsel %vm825_vm3, %v4784_v36, -inf }
 0x586   :  { %1778 = vmax.xlane.f32.xlu0 %v1777_v59  ;;  %v4792_v42 = vpop.f32.mrb[43].mxu1  ;;  %v1843_v8 = vsel %vm825_vm3, %v4788_v4, -inf }
 0x587   :  { %v1837_v45 = vsel %vm825_vm3, %v4792_v42, -inf }
 0x589   :  { %1811 = vmax.xlane.f32.xlu1 %v1810_v37 }
 0x58a   :  { %1802 = vmax.xlane.f32.xlu0 %v1801_v1 }
 0x58b   :  { %v4798_v17 = vpop.f32.mrb[44].mxu1 }
 0x58c   :  { %v4800_v57 = vpop.f32.mrb[45].mxu1  ;;  %v1852_v60 = vsel %vm825_vm3, %v4798_v17, -inf }
 0x58d   :  { %v4804_v43 = vpop.f32.mrb[46].mxu1  ;;  %1817 = vmax.xlane.f32.xlu1 %v1816_v13  ;;  %v1846_v24 = vsel %vm825_vm3, %v4800_v57, -inf }
 0x58e   :  { %1784 = vmax.xlane.f32.xlu0 %v1783_v26  ;;  %v4808_v40 = vpop.f32.mrb[47].mxu1  ;;  %v1855_v12 = vsel %vm825_vm3, %v4804_v43, -inf }
 0x58f   :  { %v1849_v0 = vsel %vm825_vm3, %v4808_v40, -inf }
 0x591   :  { %1835 = vmax.xlane.f32.xlu1 %v1834_v46 }
 0x592   :  { %1808 = vmax.xlane.f32.xlu0 %v1807_v51 }
 0x595   :  { %1841 = vmax.xlane.f32.xlu1 %v1840_v31 }
 0x596   :  { %1814 = vmax.xlane.f32.xlu0 %v1813_v56 }
 0x599   :  { %1823 = vmax.xlane.f32.xlu1 %v1822_v58 }
 0x59a   :  { %1838 = vmax.xlane.f32.xlu0 %v1837_v45 }
 0x59d   :  { %1829 = vmax.xlane.f32.xlu1 %v1828_v63 }
 0x59e   :  { %1820 = vmax.xlane.f32.xlu0 %v1819_v49 }
 0x5a1   :  { %1847 = vmax.xlane.f32.xlu1 %v1846_v24 }
 0x5a2   :  { %1844 = vmax.xlane.f32.xlu0 %v1843_v8 }
 0x5a5   :  { %1853 = vmax.xlane.f32.xlu1 %v1852_v60 }
 0x5a6   :  { %1826 = vmax.xlane.f32.xlu0 %v1825_v18 }
 0x5aa   :  { %1850 = vmax.xlane.f32.xlu0 %v1849_v0 }
 0x5ae   :  { %1832 = vmax.xlane.f32.xlu0 %v1831_v39 }
 0x5b2   :  { %1856 = vmax.xlane.f32.xlu0 %v1855_v12 }
 0x5f6   :  { %v1770_v50 = vpop.xlane.xlu1 %1769 }
 0x5f7   :  { %v1860_v48 = vsub.f32 %v4710_v61, %v1770_v50  ;;  %v1764_v41 = vpop.xlane.xlu0 %1763 }
 0x5f8   :  { %v1858_v59 = vsub.f32 %v4712_v55, %v1764_v41 }
 0x5f9   :  { %v1894_v37 = vmul.f32 1.442695, %v1860_v48 }
 0x5fa   :  { %v1890_v1 = vmul.f32 1.442695, %v1858_v59  ;;  %v1767_v13 = vpop.xlane.xlu1 %1766 }
 0x5fb   :  { %3786 = vpow2.f32 %v1894_v37  ;;  %v1859_v45 = vsub.f32 %v4720_v33, %v1767_v13 }
 0x5fc   :  { %3788 = vpow2.f32 %v1890_v1 }
 0x5fd   :  { %v1892_v39 = vmul.f32 1.442695, %v1859_v45 }
 0x602   :  { %v1794_v26 = vpop.xlane.xlu1 %1793 }
 0x603   :  { %v4842_v46 = vpop.xlane.xlu0 %1787 }
 0x605   :  { %v4844_v51 = vpop.eup %3786 }
 0x606   :  { %v1776_v31 = vpop.xlane.xlu1 %1775  ;;  %v1960_v56 = vsel %vm825_vm3, %v4844_v51, 0.0  ;;  %v4848_v58 = vpop.eup %3788 }
 0x607   :  { %1961 = vadd.xlane.f32.xlu1 %v1960_v56  ;;  %v4850_v61 = vpop.xlane.xlu0 %1790  ;;  %v1862_v55 = vsub.f32 %v4728_v27, %v1776_v31  ;;  %v1954_v49 = vsel %vm825_vm3, %v4848_v58, 0.0 }
 0x609   :  { %v1898_v18 = vmul.f32 1.442695, %v1862_v55 }
 0x60a   :  { %v1782_v63 = vpop.xlane.xlu1 %1781 }
 0x60b   :  { %v1864_v24 = vsub.f32 %v4726_v9, %v1782_v63  ;;  %1955 = vadd.xlane.f32.xlu1 %v1954_v49  ;;  %v1773_v8 = vpop.xlane.xlu0 %1772 }
 0x60c   :  { %v1861_v60 = vsub.f32 %v4716_v21, %v1773_v8 }
 0x60d   :  { %v1902_v0 = vmul.f32 1.442695, %v1864_v24 }
 0x60e   :  { %v1896_v12 = vmul.f32 1.442695, %v1861_v60  ;;  %v4858_v50 = vpop.xlane.xlu1 %1799 }
 0x60f   :  { %3790 = vpow2.f32 %v1902_v0  ;;  %v4860_v27 = vpop.xlane.xlu0 %1796 }
 0x610   :  { %3792 = vpow2.f32 %v1896_v12 }
 0x611   :  { %3794 = vpow2.f32 %v1898_v18 }
 0x612   :  { %3796 = vpow2.f32 %v1892_v39  ;;  %v4862_v33 = vpop.xlane.xlu1 %1805 }
 0x613   :  { %v1779_v48 = vpop.xlane.xlu0 %1778 }
 0x614   :  { %v1863_v1 = vsub.f32 %v4732_v20, %v1779_v48  ;;  %v1868_v20 = vsub.f32 %v4734_v44, %v1794_v26 }
 0x616   :  { %v1812_v9 = vpop.xlane.xlu1 %1811  ;;  %v1900_v60 = vmul.f32 1.442695, %v1863_v1  ;;  %v1866_v1 = vsub.f32 %v4736_v5, %v4842_v46 }
 0x617   :  { %v4864_v41 = vpop.xlane.xlu0 %1802  ;;  %v1874_v21 = vsub.f32 %v4748_v53, %v1812_v9 }
 0x618   :  { %v1906_v46 = vmul.f32 1.442695, %v1866_v1 }
 0x619   :  { %v4866_v59 = vpop.eup %3790  ;;  %v1922_v24 = vmul.f32 1.442695, %v1874_v21 }
 0x61a   :  { %v4869_v37 = vpop.eup %3792  ;;  %v1818_v13 = vpop.xlane.xlu1 %1817  ;;  %v1972_v31 = vsel %vm825_vm3, %v4866_v59, 0.0 }
 0x61b   :  { %v4874_v56 = vpop.eup %3794  ;;  %v1876_v55 = vsub.f32 %v4746_v62, %v1818_v13  ;;  %1973 = vadd.xlane.f32.xlu1 %v1972_v31  ;;  %v1785_v45 = vpop.xlane.xlu0 %1784  ;;  %v1963_v63 = vsel %vm825_vm3, %v4869_v37, 0.0 }
 0x61c   :  { %v4879_v49 = vpop.eup %3796  ;;  %v1865_v53 = vsub.f32 %v4730_v22, %v1785_v45  ;;  %1964 = vadd.xlane.f32.xlu0 %v1963_v63  ;;  %v1966_v62 = vsel %vm825_vm3, %v4874_v56, 0.0  ;;  %v1910_v22 = vmul.f32 1.442695, %v1868_v20 }
 0x61d   :  { %v1926_v8 = vmul.f32 1.442695, %v1876_v55  ;;  %v1957_v12 = vsel %vm825_vm3, %v4879_v49, 0.0 }
 0x61e   :  { %v1904_v18 = vmul.f32 1.442695, %v1865_v53  ;;  %v4883_v0 = vpop.xlane.xlu1 %1835 }
 0x61f   :  { %3798 = vpow2.f32 %v1926_v8  ;;  %1967 = vadd.xlane.f32.xlu1 %v1966_v62  ;;  %v4887_v39 = vpop.xlane.xlu0 %1808 }
 0x620   :  { %3800 = vpow2.f32 %v1904_v18  ;;  %1958 = vadd.xlane.f32.xlu0 %v1957_v12  ;;  %v1869_v18 = vsub.f32 %v4740_v7, %v4860_v27  ;;  %v1872_v7 = vsub.f32 %v4758_v47, %v4862_v33  ;;  %v1867_v27 = vsub.f32 %v4744_v38, %v4850_v61 }
 0x621   :  { %3802 = vpow2.f32 %v1922_v24 }
 0x622   :  { %3804 = vpow2.f32 %v1900_v60  ;;  %v4891_v44 = vpop.xlane.xlu1 %1841 }
 0x623   :  { %v1815_v26 = vpop.xlane.xlu0 %1814  ;;  %3806 = vpow2.f32 %v1910_v22  ;;  %v1884_v61 = vsub.f32 %v4782_v34, %v4891_v44  ;;  %v1882_v34 = vsub.f32 %v4784_v36, %v4883_v0  ;;  %v1873_v44 = vsub.f32 %v4764_v10, %v4887_v39 }
 0x624   :  { %v1875_v31 = vsub.f32 %v4756_v2, %v1815_v26  ;;  %v1871_v0 = vsub.f32 %v4768_v11, %v4864_v41 }
 0x625   :  { %v1938_v36 = vmul.f32 1.442695, %v1882_v34  ;;  %v1920_v39 = vmul.f32 1.442695, %v1873_v44 }
 0x626   :  { %v1824_v48 = vpop.xlane.xlu1 %1823  ;;  %v1924_v62 = vmul.f32 1.442695, %v1875_v31 }
 0x627   :  { %v4893_v9 = vpop.xlane.xlu0 %1838  ;;  %v1878_v2 = vsub.f32 %v4772_v32, %v1824_v48  ;;  %v1912_v48 = vmul.f32 1.442695, %v1869_v18 }
 0x629   :  { %v4895_v21 = vpop.eup %3798  ;;  %v1930_v32 = vmul.f32 1.442695, %v1878_v2 }
 0x62a   :  { %v4899_v13 = vpop.eup %3800  ;;  %v1830_v55 = vpop.xlane.xlu1 %1829  ;;  %v2008_v45 = vsel %vm825_vm3, %v4895_v21, 0.0 }
 0x62b   :  { %v4904_v63 = vpop.eup %3802  ;;  %v1880_v53 = vsub.f32 %v4770_v25, %v1830_v55  ;;  %2009 = vadd.xlane.f32.xlu1 %v2008_v45  ;;  %v1821_v20 = vpop.xlane.xlu0 %1820  ;;  %v1975_v24 = vsel %vm825_vm3, %v4899_v13, 0.0  ;;  %v1870_v55 = vsub.f32 %v4760_v16, %v4858_v50  ;;  %v1918_v45 = vmul.f32 1.442695, %v1872_v7 }
 0x62c   :  { %v4909_v8 = vpop.eup %3804  ;;  %v1877_v5 = vsub.f32 %v4752_v28, %v1821_v20  ;;  %1976 = vadd.xlane.f32.xlu0 %v1975_v24  ;;  %v2002_v25 = vsel %vm825_vm3, %v4904_v63, 0.0 }
 0x62d   :  { %v1934_v60 = vmul.f32 1.442695, %v1880_v53  ;;  %v4917_v22 = vpop.eup %3806  ;;  %v1969_v28 = vsel %vm825_vm3, %v4909_v8, 0.0  ;;  %v1908_v53 = vmul.f32 1.442695, %v1867_v27 }
 0x62e   :  { %v1928_v12 = vmul.f32 1.442695, %v1877_v5  ;;  %v1984_v1 = vsel %vm825_vm3, %v4917_v22, 0.0  ;;  %v1848_v47 = vpop.xlane.xlu1 %1847  ;;  %v1914_v38 = vmul.f32 1.442695, %v1870_v55 }
 0x62f   :  { %3808 = vpow2.f32 %v1934_v60  ;;  %2003 = vadd.xlane.f32.xlu1 %v2002_v25  ;;  %v4919_v26 = vpop.xlane.xlu0 %1844 }
 0x630   :  { %3810 = vpow2.f32 %v1928_v12  ;;  %1970 = vadd.xlane.f32.xlu0 %v1969_v28  ;;  %v1885_v11 = vsub.f32 %v4788_v4, %v4919_v26 }
 0x631   :  { %3812 = vpow2.f32 %v1906_v46 }
 0x632   :  { %3814 = vpow2.f32 %v1924_v62  ;;  %v1854_v62 = vpop.xlane.xlu1 %1853 }
 0x633   :  { %1985 = vadd.xlane.f32.xlu1 %v1984_v1  ;;  %v1827_v31 = vpop.xlane.xlu0 %1826  ;;  %3816 = vpow2.f32 %v1930_v32  ;;  %v1888_v10 = vsub.f32 %v4798_v17, %v1854_v62  ;;  %v1886_v17 = vsub.f32 %v4800_v57, %v1848_v47  ;;  %v1883_v57 = vsub.f32 %v4792_v42, %v4893_v9 }
 0x634   :  { %3818 = vpow2.f32 %v1912_v48  ;;  %v1879_v5 = vsub.f32 %v4780_v52, %v1827_v31  ;;  %v1942_v52 = vmul.f32 1.442695, %v1884_v61  ;;  %v1944_v47 = vmul.f32 1.442695, %v1885_v11 }
 0x635   :  { %3820 = vpow2.f32 %v1918_v45  ;;  %v1950_v55 = vmul.f32 1.442695, %v1888_v10  ;;  %v1916_v45 = vmul.f32 1.442695, %v1871_v0  ;;  %v1946_v61 = vmul.f32 1.442695, %v1886_v17 }
 0x636   :  { %3822 = vpow2.f32 %v1908_v53  ;;  %v1932_v12 = vmul.f32 1.442695, %v1879_v5 }
 0x637   :  { %v4931_v20 = vpop.xlane.xlu0 %1850  ;;  %3824 = vpow2.f32 %v1914_v38 }
 0x638   :  { %v1887_v62 = vsub.f32 %v4808_v40, %v4931_v20 }
 0x639   :  { %v4933_v33 = vpop.eup %3808 }
 0x63a   :  { %v4937_v24 = vpop.eup %3810  ;;  %v2020_v16 = vsel %vm825_vm3, %v4933_v33, 0.0 }
 0x63b   :  { %v4942_v50 = vpop.eup %3812  ;;  %2021 = vadd.xlane.f32.xlu1 %v2020_v16  ;;  %v1833_v46 = vpop.xlane.xlu0 %1832  ;;  %v2011_v2 = vsel %vm825_vm3, %v4937_v24, 0.0 }
 0x63c   :  { %v4946_v60 = vpop.eup %3814  ;;  %v1881_v18 = vsub.f32 %v4776_v29, %v1833_v46  ;;  %2012 = vadd.xlane.f32.xlu0 %v2011_v2  ;;  %v1978_v28 = vsel %vm825_vm3, %v4942_v50, 0.0 }
 0x63d   :  { %v4955_v7 = vpop.eup %3816  ;;  %v2005_v29 = vsel %vm825_vm3, %v4946_v60, 0.0 }
 0x63e   :  { %v1936_v25 = vmul.f32 1.442695, %v1881_v18  ;;  %v4959_v32 = vpop.eup %3818  ;;  %v2014_v27 = vsel %vm825_vm3, %v4955_v7, 0.0  ;;  %v1940_v18 = vmul.f32 1.442695, %v1883_v57 }
 0x63f   :  { %1979 = vadd.xlane.f32.xlu1 %v1978_v28  ;;  %v4966_v48 = vpop.eup %3820  ;;  %v1987_v1 = vsel %vm825_vm3, %v4959_v32, 0.0  ;;  %v1857_v16 = vpop.xlane.xlu0 %1856 }
 0x640   :  { %3826 = vpow2.f32 %v1936_v25  ;;  %2006 = vadd.xlane.f32.xlu0 %v2005_v29  ;;  %v4970_v31 = vpop.eup %3822  ;;  %v1996_v41 = vsel %vm825_vm3, %v4966_v48, 0.0  ;;  %v1889_v34 = vsub.f32 %v4804_v43, %v1857_v16 }
 0x641   :  { %3828 = vpow2.f32 %v1942_v52  ;;  %v4977_v53 = vpop.eup %3824  ;;  %v1981_v38 = vsel %vm825_vm3, %v4970_v31, 0.0 }
 0x642   :  { %3830 = vpow2.f32 %v1932_v12  ;;  %v1990_v4 = vsel %vm825_vm3, %v4977_v53, 0.0  ;;  %v1952_v12 = vmul.f32 1.442695, %v1889_v34 }
 0x643   :  { %2015 = vadd.xlane.f32.xlu1 %v2014_v27  ;;  %3832 = vpow2.f32 %v1938_v36  ;;  %v1948_v36 = vmul.f32 1.442695, %v1887_v62 }
 0x644   :  { %1988 = vadd.xlane.f32.xlu0 %v1987_v1  ;;  %3834 = vpow2.f32 %v1920_v39 }
 0x645   :  { %3836 = vpow2.f32 %v1950_v55 }
 0x646   :  { %3838 = vpow2.f32 %v1916_v45 }
 0x647   :  { %1997 = vadd.xlane.f32.xlu1 %v1996_v41  ;;  %3840 = vpow2.f32 %v1946_v61 }
 0x648   :  { %1982 = vadd.xlane.f32.xlu0 %v1981_v38  ;;  %3842 = vpow2.f32 %v1944_v47 }
 0x649   :  { %3844 = vpow2.f32 %v1940_v18 }
 0x64a   :  { %v4981_v5 = vpop.eup %3826  ;;  %3846 = vpow2.f32 %v1952_v12 }
 0x64b   :  { %v4987_v26 = vpop.eup %3828  ;;  %1991 = vadd.xlane.f32.xlu1 %v1990_v4  ;;  %v2023_v46 = vsel %vm825_vm3, %v4981_v5, 0.0  ;;  %3848 = vpow2.f32 %v1948_v36 }
 0x64c   :  { %v4991_v2 = vpop.eup %3830  ;;  %2024 = vadd.xlane.f32.xlu0 %v2023_v46  ;;  %v2032_v42 = vsel %vm825_vm3, %v4987_v26, 0.0 }
 0x64d   :  { %v4996_v9 = vpop.eup %3832  ;;  %v2017_v52 = vsel %vm825_vm3, %v4991_v2, 0.0 }
 0x64e   :  { %v5000_v44 = vpop.eup %3834  ;;  %v2026_v43 = vsel %vm825_vm3, %v4996_v9, 0.0 }
 0x64f   :  { %2033 = vadd.xlane.f32.xlu1 %v2032_v42  ;;  %v5006_v25 = vpop.eup %3836  ;;  %v1999_v28 = vsel %vm825_vm3, %v5000_v44, 0.0 }
 0x650   :  { %2018 = vadd.xlane.f32.xlu0 %v2017_v52  ;;  %v5010_v29 = vpop.eup %3838  ;;  %v2044_v10 = vsel %vm825_vm3, %v5006_v25, 0.0 }
 0x651   :  { %v5014_v0 = vpop.eup %3840  ;;  %v1993_v40 = vsel %vm825_vm3, %v5010_v29, 0.0 }
 0x652   :  { %v5018_v20 = vpop.eup %3842  ;;  %v2038_v39 = vsel %vm825_vm3, %v5014_v0, 0.0 }
 0x653   :  { %2027 = vadd.xlane.f32.xlu1 %v2026_v43  ;;  %v2035_v27 = vsel %vm825_vm3, %v5018_v20, 0.0  ;;  %v5024_v1 = vpop.eup %3844 }
 0x654   :  { %2000 = vadd.xlane.f32.xlu0 %v1999_v28  ;;  %v2029_v17 = vsel %vm825_vm3, %v5024_v1, 0.0  ;;  %v5028_v55 = vpop.eup %3846 }
 0x655   :  { %v2047_v45 = vsel %vm825_vm3, %v5028_v55, 0.0  ;;  %v5032_v11 = vpop.eup %3848 }
 0x656   :  { %v2041_v41 = vsel %vm825_vm3, %v5032_v11, 0.0 }
 0x657   :  { %2045 = vadd.xlane.f32.xlu1 %v2044_v10 }
 0x658   :  { %1994 = vadd.xlane.f32.xlu0 %v1993_v40 }
 0x65b   :  { %2039 = vadd.xlane.f32.xlu1 %v2038_v39 }
 0x65c   :  { %2036 = vadd.xlane.f32.xlu0 %v2035_v27 }
 0x660   :  { %2030 = vadd.xlane.f32.xlu0 %v2029_v17 }
 0x664   :  { %2048 = vadd.xlane.f32.xlu0 %v2047_v45 }
 0x668   :  { %2042 = vadd.xlane.f32.xlu0 %v2041_v41 }
 0x66c   :  { %2131 = vrot.lane.b32.xlu1 %v4582_v19, %s3977_s13 }
 0x670   :  { %2247 = vrot.lane.b32.xlu1 %v4633_v30, %s3977_s13 }
 0x674   :  { %2305 = vrot.lane.b32.xlu1 %v4656_v6, %s3977_s13 }
 0x67e   :  { %2189 = vrot.lane.b32.xlu0 %v4609_v14, %s3977_s13 }
 0x694   :  { %v1962_v38 = vpop.xlane.xlu1 %1961 }
 0x698   :  { %v1956_v61 = vpop.xlane.xlu1 %1955 }
 0x699   :  { %3850 = vrcp.f32 %v1956_v61 }
 0x6a3   :  { %v3851_v19 = vpop.eup %3850 }
 0x6a4   :  { %v2082_v6 = vmul.f32 %v3851_v19, %v4848_v58 }
 0x6a8   :  { %v1974_v4 = vpop.xlane.xlu1 %1973 }
 0x6a9   :  { %v1965_v57 = vpop.xlane.xlu0 %1964 }
 0x6ac   :  { %v1968_v16 = vpop.xlane.xlu1 %1967 }
 0x6ad   :  { %v1959_v47 = vpop.xlane.xlu0 %1958 }
 0x6ae   :  { %3852 = vrcp.f32 %v1959_v47 }
 0x6af   :  { %3854 = vrcp.f32 %v1965_v57 }
 0x6b0   :  { %3856 = vrcp.f32 %v1962_v38 }
 0x6b1   :  { %3858 = vrcp.f32 %v1968_v16 }
 0x6b8   :  { %v3853_v46 = vpop.eup %3852  ;;  %v5044_v18 = vpop.xlane.xlu1 %2009 }
 0x6b9   :  { %v1977_v30 = vpop.xlane.xlu0 %1976  ;;  %v2083_v34 = vmul.f32 %v3853_v46, %v4879_v49  ;;  %v3855_v14 = vpop.eup %3854 }
 0x6ba   :  { %v3857_v52 = vpop.eup %3856  ;;  %v2085_v43 = vmul.f32 %v3855_v14, %v4869_v37 }
 0x6bb   :  { %v2114_v42 = vpack.c.bf16 %v2083_v34, %v2082_v6  ;;  %v2084_v36 = vmul.f32 %v3857_v52, %v4844_v51  ;;  %v3859_v40 = vpop.eup %3858 }
 0x6bc   :  { %v2004_v28 = vpop.xlane.xlu1 %2003  ;;  %v2086_v17 = vmul.f32 %v3859_v40, %v4874_v56 }
 0x6bd   :  { %v1971_v62 = vpop.xlane.xlu0 %1970  ;;  %v2137_v12 = vsel %vm825_vm3, %v2114_v42, 0  ;;  %v2115_v58 = vpack.c.bf16 %v2085_v43, %v2084_v36 }
 0x6be   :  { %3860 = vrcp.f32 %v1971_v62  ;;  %3352 = vmatpush3.bf16.xpose.msra.mxu0 %v2137_v12 }
 0x6bf   :  { %3353 = vmatprep.subr.bf16.mxu0 %v5444_v54  ;;  %3862 = vrcp.f32 %v1977_v30  ;;  %v2140_v10 = vsel %vm825_vm3, %v2115_v58, 0 }
 0x6c0   :  { %3864 = vrcp.f32 %v1974_v4  ;;  %v1986_v49 = vpop.xlane.xlu1 %1985 }
 0x6c6   :  { %3354 = vmatpush3.bf16.xpose.msra.mxu0 %v2140_v10 }
 0x6c7   :  { %3355 = vmatprep.subr.bf16.mxu0 %v5444_v54 }
 0x6c8   :  { %v3861_v39 = vpop.eup %3860  ;;  %v5054_v27 = vpop.xlane.xlu1 %2021 }
 0x6c9   :  { %v2013_v37 = vpop.xlane.xlu0 %2012  ;;  %v2087_v45 = vmul.f32 %v3861_v39, %v4909_v8  ;;  %v3863_v41 = vpop.eup %3862 }
 0x6ca   :  { %v3865_v38 = vpop.eup %3864  ;;  %v2089_v4 = vmul.f32 %v3863_v41, %v4899_v13 }
 0x6cb   :  { %v2116_v51 = vpack.c.bf16 %v2087_v45, %v2086_v17  ;;  %v2088_v16 = vmul.f32 %v3865_v38, %v4866_v59 }
 0x6cc   :  { %v1980_v61 = vpop.xlane.xlu1 %1979 }
 0x6cd   :  { %v2007_v57 = vpop.xlane.xlu0 %2006  ;;  %v2143_v47 = vsel %vm825_vm3, %v2116_v51, 0  ;;  %v2117_v30 = vpack.c.bf16 %v2089_v4, %v2088_v16  ;;  %3866 = vrcp.f32 %v1980_v61 }
 0x6ce   :  { %3356 = vmatpush3.bf16.xpose.msra.mxu0 %v2143_v47 }
 0x6cf   :  { %3357 = vmatprep.subr.bf16.mxu0 %v5444_v54  ;;  %v2146_v6 = vsel %vm825_vm3, %v2117_v30, 0 }
 0x6d0   :  { %v2016_v19 = vpop.xlane.xlu1 %2015 }
 0x6d1   :  { %v1989_v46 = vpop.xlane.xlu0 %1988 }
 0x6d4   :  { %v1998_v56 = vpop.xlane.xlu1 %1997 }
 0x6d5   :  { %v1983_v8 = vpop.xlane.xlu0 %1982 }
 0x6d6   :  { %3868 = vrcp.f32 %v1983_v8  ;;  %3358 = vmatpush3.bf16.xpose.msra.mxu0 %v2146_v6 }
 0x6d7   :  { %3870 = vrcp.f32 %v2007_v57  ;;  %3375 = vmatprep.subr.bf16.mxu0 %v5444_v54  ;;  %v3867_v42 = vpop.eup %3866 }
 0x6d8   :  { %3872 = vrcp.f32 %v1989_v46  ;;  %v1992_v13 = vpop.xlane.xlu1 %1991  ;;  %v2090_v36 = vmul.f32 %v3867_v42, %v4942_v50 }
 0x6d9   :  { %3874 = vrcp.f32 %v2004_v28  ;;  %v2025_v34 = vpop.xlane.xlu0 %2024 }
 0x6da   :  { %3876 = vrcp.f32 %v1986_v49 }
 0x6db   :  { %3878 = vrcp.f32 %v2013_v37 }
 0x6dc   :  { %v5064_v14 = vpop.xlane.xlu1 %2033  ;;  %3880 = vrcp.f32 %v5044_v18 }
 0x6dd   :  { %v2019_v59 = vpop.xlane.xlu0 %2018  ;;  %3882 = vrcp.f32 %v1992_v13 }
 0x6e0   :  { %v3869_v52 = vpop.eup %3868  ;;  %v2028_v62 = vpop.xlane.xlu1 %2027 }
 0x6e1   :  { %v3871_v12 = vpop.eup %3870  ;;  %v2001_v43 = vpop.xlane.xlu0 %2000  ;;  %v2091_v58 = vmul.f32 %v3869_v52, %v4970_v31 }
 0x6e2   :  { %v3873_v10 = vpop.eup %3872  ;;  %v2099_v37 = vmul.f32 %v3871_v12, %v4946_v60 }
 0x6e3   :  { %v3875_v40 = vpop.eup %3874  ;;  %v2118_v28 = vpack.c.bf16 %v2091_v58, %v2090_v36  ;;  %v2093_v41 = vmul.f32 %v3873_v10, %v4959_v32 }
 0x6e4   :  { %v3877_v39 = vpop.eup %3876  ;;  %v5069_v49 = vpop.xlane.xlu1 %2045  ;;  %v2098_v50 = vmul.f32 %v3875_v40, %v4904_v63 }
 0x6e5   :  { %v1995_v17 = vpop.xlane.xlu0 %1994  ;;  %v2195_v45 = vsel %vm825_vm3, %v2118_v28, 0  ;;  %v2092_v31 = vmul.f32 %v3877_v39, %v4917_v22  ;;  %v3879_v57 = vpop.eup %3878 }
 0x6e6   :  { %3884 = vrcp.f32 %v1995_v17  ;;  %3364 = vmatpush3.bf16.xpose.msra.mxu1 %v2195_v45  ;;  %v2122_v38 = vpack.c.bf16 %v2099_v37, %v2098_v50  ;;  %v3881_v60 = vpop.eup %3880  ;;  %v2101_v22 = vmul.f32 %v3879_v57, %v4937_v24 }
 0x6e7   :  { %3886 = vrcp.f32 %v2019_v59  ;;  %3365 = vmatprep.subr.bf16.mxu1 %v5444_v54  ;;  %v2119_v61 = vpack.c.bf16 %v2093_v41, %v2092_v31  ;;  %v3883_v16 = vpop.eup %3882 }
 0x6e8   :  { %3888 = vrcp.f32 %v2001_v43  ;;  %v5077_v18 = vpop.xlane.xlu1 %2039  ;;  %v2253_v47 = vsel %vm825_vm3, %v2122_v38, 0  ;;  %v2094_v24 = vmul.f32 %v3883_v16, %v4977_v53 }
 0x6e9   :  { %3890 = vrcp.f32 %v2016_v19  ;;  %v2037_v51 = vpop.xlane.xlu0 %2036  ;;  %v2198_v63 = vsel %vm825_vm3, %v2119_v61, 0  ;;  %v2100_v19 = vmul.f32 %v3881_v60, %v4895_v21 }
 0x6ea   :  { %3892 = vrcp.f32 %v1998_v56 }
 0x6eb   :  { %3894 = vrcp.f32 %v2025_v34  ;;  %v2123_v56 = vpack.c.bf16 %v2101_v22, %v2100_v19 }
 0x6ec   :  { %v2132_v32 = vpop.permute.xlu1 %2131 }
 0x6ed   :  { %3360 = vmatmul.mubr.msk.bf16.vlgmr.msra.gmra.mrb[44].mxu0 %vm825_vm3, %v2132_v32  ;;  %v2031_v4 = vpop.xlane.xlu0 %2030  ;;  %v2256_v21 = vsel %vm825_vm3, %v2123_v56, 0 }
 0x6ee   :  { %3376 = vmatpush3.bf16.xpose.msra.mxu0 %v2253_v47  ;;  %3366 = vmatpush3.bf16.xpose.msra.mxu1 %v2198_v63  ;;  %3896 = vrcp.f32 %v2031_v4 }
 0x6ef   :  { %3377 = vmatprep.subr.bf16.mxu0 %v5444_v54  ;;  %3367 = vmatprep.subr.bf16.mxu1 %v5444_v54  ;;  %3898 = vrcp.f32 %v5054_v27 }
 0x6f0   :  { %v3885_v46 = vpop.eup %3884  ;;  %3383 = vmatprep.mubr.msk.bf16.mxu0 %vm3976_vm4, %v5444_v54  ;;  %3900 = vrcp.f32 %v2028_v62  ;;  %v2248_v38 = vpop.permute.xlu1 %2247 }
 0x6f1   :  { %v3887_v30 = vpop.eup %3886  ;;  %v2095_v8 = vmul.f32 %v3885_v46, %v5010_v29  ;;  %v2049_v27 = vpop.xlane.xlu0 %2048  ;;  %3902 = vrcp.f32 %v2037_v51 }
 0x6f2   :  { %v3889_v6 = vpop.eup %3888  ;;  %v2103_v52 = vmul.f32 %v3887_v30, %v4991_v2  ;;  %3904 = vrcp.f32 %v5064_v14 }
 0x6f3   :  { %v3891_v13 = vpop.eup %3890  ;;  %v2120_v34 = vpack.c.bf16 %v2095_v8, %v2094_v24  ;;  %v2097_v12 = vmul.f32 %v3889_v6, %v5000_v44  ;;  %v2390_v6 = vld [vmem:[%s5415_s6 + $0x10] sm:$0xff] }
 0x6f4   :  { %v3893_v59 = vpop.eup %3892  ;;  %v2102_v53 = vmul.f32 %v3891_v13, %v4955_v7  ;;  %v2306_v22 = vpop.permute.xlu1 %2305 }
 0x6f5   :  { %v2201_v42 = vsel %vm825_vm3, %v2120_v34, 0  ;;  %v2096_v29 = vmul.f32 %v3893_v59, %v4966_v48  ;;  %v3895_v62 = vpop.eup %3894  ;;  %v2043_v10 = vpop.xlane.xlu0 %2042 }
 0x6f6   :  { %3378 = vmatpush3.bf16.xpose.msra.mxu0 %v2256_v21  ;;  %3368 = vmatpush3.bf16.xpose.msra.mxu1 %v2201_v42  ;;  %v2124_v43 = vpack.c.bf16 %v2103_v52, %v2102_v53  ;;  %v2105_v39 = vmul.f32 %v3895_v62, %v4981_v5  ;;  %3906 = vrcp.f32 %v2043_v10  ;;  %v2499_v21 = vld [vmem:[%s5417_s8] sm:$0xff]  ;;  %v2501_v42 = vld [vmem:[%s5417_s8 + $0x10] sm:$0xff]  ;;  %v2389_v10 = vld [vmem:[%s5415_s6 + $0x8] sm:$0xff] }
 0x6f7   :  { %3379 = vmatprep.subr.bf16.mxu0 %v5444_v54  ;;  %3369 = vmatprep.subr.bf16.mxu1 %v5444_v54  ;;  %v2121_v36 = vpack.c.bf16 %v2097_v12, %v2096_v29  ;;  %3908 = vrcp.f32 %v5077_v18  ;;  %v2503_v52 = vld [vmem:[%s5417_s8 + $0x20] sm:$0xff]  ;;  %v2505_v12 = vld [vmem:[%s5417_s8 + $0x30] sm:$0xff] }
 0x6f8   :  { %v3897_v58 = vpop.eup %3896  ;;  %v2259_v40 = vsel %vm825_vm3, %v2124_v43, 0  ;;  %3910 = vrcp.f32 %v2049_v27  ;;  %v2507_v27 = vld [vmem:[%s5417_s8 + $0x40] sm:$0xff]  ;;  %v2509_v62 = vld [vmem:[%s5417_s8 + $0x50] sm:$0xff] }
 0x6f9   :  { %v3899_v2 = vpop.eup %3898  ;;  %v2204_v28 = vsel %vm825_vm3, %v2121_v36, 0  ;;  %v2107_v7 = vmul.f32 %v3897_v58, %v5024_v1  ;;  %v2190_v5 = vpop.permute.xlu0 %2189  ;;  %3912 = vrcp.f32 %v5069_v49  ;;  %v3644_v53 = vld [vmem:[%s5414_s5] sm:$0xff]  }
 0x6fa   :  { %v3901_v44 = vpop.eup %3900  ;;  %v2104_v48 = vmul.f32 %v3899_v2, %v4933_v33 }
 0x6fb   :  { %v2106_v14 = vmul.f32 %v3901_v44, %v4996_v9  ;;  %v3903_v37 = vpop.eup %3902  ;;  %v2511_v44 = vld [vmem:[%s5417_s8 + $0x60] sm:$0xff] }
 0x6fc   :  { %v2125_v17 = vpack.c.bf16 %v2105_v39, %v2104_v48  ;;  %v3905_v41 = vpop.eup %3904  ;;  %v2109_v33 = vmul.f32 %v3903_v37, %v5018_v20  ;;  %v2912_v39 = vld [vmem:[%s5419_s10] sm:$0xff]  ;;  %v2914_v48 = vld [vmem:[%s5419_s10 + $0x10] sm:$0xff]  ;;  %v2508_v37 = vld [vmem:[%s5417_s8 + $0x48] sm:$0xff] }
 0x6fd   :  { %v2126_v45 = vpack.c.bf16 %v2107_v7, %v2106_v14  ;;  %v2108_v9 = vmul.f32 %v3905_v41, %v4987_v26  ;;  %v2500_v7 = vld [vmem:[%s5417_s8 + $0x8] sm:$0xff]  ;;  %v2502_v14 = vld [vmem:[%s5417_s8 + $0x18] sm:$0xff] }
 0x6fe   :  { %3380 = vmatpush3.bf16.xpose.msra.mxu0 %v2259_v40  ;;  %3370 = vmatpush3.bf16.xpose.msra.mxu1 %v2204_v28  ;;  %v2262_v1 = vsel %vm825_vm3, %v2125_v17, 0  ;;  %v2513_v40 = vld [vmem:[%s5417_s8 + $0x70] sm:$0xff]  ;;  %v2391_v28 = vld [vmem:[%s5415_s6 + $0x18] sm:$0xff]  ;;  %v2504_v17 = vld [vmem:[%s5417_s8 + $0x28] sm:$0xff] }
 0x6ff   :  { %3381 = vmatprep.subr.bf16.mxu0 %v5444_v54  ;;  %3387 = vmatprep.subr.bf16.mxu1 %v5444_v54  ;;  %v2311_v50 = vsel %vm825_vm3, %v2126_v45, 0  ;;  %v2127_v31 = vpack.c.bf16 %v2109_v33, %v2108_v9  ;;  %v2506_v45 = vld [vmem:[%s5417_s8 + $0x38] sm:$0xff] }
 0x700   :  { %v3907_v18 = vpop.eup %3906  ;;  %v2510_v41 = vld [vmem:[%s5417_s8 + $0x58] sm:$0xff] }
 0x701   :  { %v3909_v51 = vpop.eup %3908  ;;  %v2314_v20 = vsel %vm825_vm3, %v2127_v31, 0  ;;  %v2111_v61 = vmul.f32 %v3907_v18, %v5032_v11  ;;  %v2915_v33 = vld [vmem:[%s5419_s10 + $0x18] sm:$0xff] }
 0x702   :  { %v2110_v26 = vmul.f32 %v3909_v51, %v5014_v0  ;;  %v3911_v60 = vpop.eup %3910 }
 0x703   :  { %v3913_v32 = vpop.eup %3912  ;;  %v2113_v49 = vmul.f32 %v3911_v60, %v5028_v55 }
 0x704   :  { %v2128_v57 = vpack.c.bf16 %v2111_v61, %v2110_v26  ;;  %v2112_v4 = vmul.f32 %v3913_v32, %v5006_v25  ;;  %v2388_v25 = vld [vmem:[%s5415_s6] sm:$0xff] }
 0x705   :  { %3372 = vmatmul.mubr.msk.bf16.vlgmr.msra.gmra.mrb[48].mxu1 %vm825_vm3, %v2190_v5  ;;  %v2512_v5 = vld [vmem:[%s5417_s8 + $0x68] sm:$0xff] }
 0x706   :  { %3382 = vmatpush3.bf16.xpose.msra.mxu0 %v2262_v1  ;;  %3388 = vmatpush3.bf16.xpose.msra.mxu1 %v2311_v50  ;;  %v2317_v47 = vsel %vm825_vm3, %v2128_v57, 0  ;;  %v2129_v63 = vpack.c.bf16 %v2113_v49, %v2112_v4  ;;  %v2514_v1 = vld [vmem:[%s5417_s8 + $0x78] sm:$0xff]  ;;  %v2913_v50 = vld [vmem:[%s5419_s10 + $0x8] sm:$0xff]  ;;  %s3978_s10 = smov [#allocation2]  }
 0x707   :  { %3389 = vmatprep.subr.bf16.mxu1 %v5444_v54  ;;  %3395 = vmatprep.mubr.msk.bf16.mxu1 %vm3976_vm4, %v5444_v54 }
 0x708   :  { %v2320_v11 = vsel %vm825_vm3, %v2129_v63, 0 }
 0x70d   :  { %3384 = vmatmul.mubr.msk.bf16.vlgmr.msra.gmra.mrb[48].mxu0 %vm825_vm3, %v2248_v38 }
 0x70e   :  { %3390 = vmatpush3.bf16.xpose.msra.mxu1 %v2314_v20  ;;  %3403 = vmatprep.mubr.msk.bf16.mxu0 %vm251_vm0, %v3644_v53  ;;  %v3652_v53 = vld [vmem:[%s5416_s7 + $0x30] sm:$0xff]  }
 0x70f   :  { %3391 = vmatprep.subr.bf16.mxu1 %v5444_v54 }
 0x716   :  { %3392 = vmatpush3.bf16.xpose.msra.mxu1 %v2317_v47 }
 0x717   :  { %3393 = vmatprep.subr.bf16.mxu1 %v5444_v54 }
 0x71e   :  { %3394 = vmatpush3.bf16.xpose.msra.mxu1 %v2320_v11 }
 0x725   :  { %3396 = vmatmul.mubr.msk.bf16.vlgmr.msra.gmra.mrb[52].mxu1 %vm825_vm3, %v2306_v22 }
 0x7c0   :  { %v2182_v0 = vpop.f32.mrb[44].mxu0 }
 0x7c1   :  { %v3361_v16 = vpop.f32.mrb[45].mxu0 }
 0x7c2   :  { %v2185_v19 = vpop.f32.mrb[46].mxu0 }
 0x7c3   :  { %v3362_v46 = vpop.f32.mrb[47].mxu0 }
 0x7d8   :  { %v2240_v30 = vpop.f32.mrb[48].mxu1 }
 0x7d9   :  { %v3628_v56 = vpack.i.bf16 %v2240_v30, %v2182_v0  ;;  %v3373_v24 = vpop.f32.mrb[49].mxu1 }
 0x7da   :  { %v2243_v55 = vpop.f32.mrb[50].mxu1 }
 0x7db   :  { %3629 = vrot.lane.b32.xlu0 %v3628_v56, %s3977_s13  ;;  %v3374_v54 = vpop.f32.mrb[51].mxu1  ;;  %v3946_v56 = vld [vmem:[%s5409_s0] sm:$0xff]  ;;  %v3947_v55 = vld [vmem:[%s5409_s0 + $0x18] sm:$0xff] }
 0x7df   :  { %2394 = vperm.xlu0 %3462, %v2388_v25   ;;  %v3948_v25 = vld [vmem:[%s5409_s0 + $0x8] sm:$0xff] }
 0x7e0   :  { %v2298_v8 = vpop.f32.mrb[48].mxu0 }
 0x7e1   :  { %v3385_v13 = vpop.f32.mrb[49].mxu0 }
 0x7e2   :  { %v2301_v34 = vpop.f32.mrb[50].mxu0 }
 0x7e3   :  { %v3386_v59 = vpop.f32.mrb[51].mxu0  ;;  %2404 = vperm.xlu0 %3462, %v2390_v6   ;;  %v3949_v6 = vld [vmem:[%s5409_s0 + $0x10] sm:$0xff] }
 0x7e7   :  { %2517 = vperm.xlu0 %3462, %v2499_v21   ;;  %v3647_v21 = vld [vmem:[%s5416_s7 + $0x8] sm:$0xff]  }
 0x7eb   :  { %2527 = vperm.xlu0 %3462, %v2501_v42   ;;  %v3648_v42 = vld [vmem:[%s5416_s7 + $0x10] sm:$0xff]  }
 0x7ef   :  { %2537 = vperm.xlu0 %3462, %v2503_v52   ;;  %v3649_v52 = vld [vmem:[%s5416_s7 + $0x18] sm:$0xff]  }
 0x7f3   :  { %2547 = vperm.xlu0 %3462, %v2505_v12   ;;  %v3650_v12 = vld [vmem:[%s5416_s7 + $0x20] sm:$0xff]  }
 0x7f7   :  { %2557 = vperm.xlu0 %3462, %v2507_v27   ;;  %v3651_v27 = vld [vmem:[%s5416_s7 + $0x28] sm:$0xff]  }
 0x7f8   :  { %v2356_v29 = vpop.f32.mrb[52].mxu1 }
 0x7f9   :  { %v3633_v43 = vpack.i.bf16 %v2356_v29, %v2298_v8  ;;  %v3397_v36 = vpop.f32.mrb[53].mxu1  ;;  %v3653_v29 = vld [vmem:[%s5416_s7 + $0x38] sm:$0xff]  }
 0x7fa   :  { %v2359_v58 = vpop.f32.mrb[54].mxu1 }
 0x7fb   :  { %2567 = vperm.xlu0 %3462, %v2509_v62   ;;  %3634 = vrot.lane.b32.xlu1 %v3633_v43, %s3977_s13  ;;  %v3398_v2 = vpop.f32.mrb[55].mxu1  ;;  %v3654_v62 = vld [vmem:[%s5418_s9] sm:$0xff]   ;;  %s3010_s13 = sshll.u32 %s3978_s10, 4  ;;  %s3011_s13 = int_to_ptr.vmem [resolvable:$true] %s3010_s13 }
 0x7fc   :  { %p3955_p1 = scmp.lt.s32.totalorder %s3011_s13, %s3011_s13 }
 0x7ff   :  { %2577 = vperm.xlu0 %3462, %v2511_v44   ;;  %2399 = vperm.xlu1 %3463, %v2389_v10  }
 0x803   :  { %2587 = vperm.xlu0 %3462, %v2513_v40   ;;  %2409 = vperm.xlu1 %3463, %v2391_v28  }
 0x807   :  { %2918 = vperm.xlu0 %3462, %v2912_v39   ;;  %2522 = vperm.xlu1 %3463, %v2500_v7  }
 0x80b   :  { %2928 = vperm.xlu0 %3462, %v2914_v48   ;;  %2532 = vperm.xlu1 %3463, %v2502_v14  }
 0x80f   :  { %2542 = vperm.xlu1 %3463, %v2504_v17  }
 0x813   :  { %2552 = vperm.xlu1 %3463, %v2506_v45  }
 0x817   :  { %2562 = vperm.xlu1 %3463, %v2508_v37  }
 0x81b   :  { %2572 = vperm.xlu1 %3463, %v2510_v41  }
 0x81f   :  { %2582 = vperm.xlu1 %3463, %v2512_v5  }
 0x823   :  { %2592 = vperm.xlu1 %3463, %v2514_v1  }
 0x827   :  { %2923 = vperm.xlu1 %3463, %v2913_v50  }
 0x82b   :  { %2933 = vperm.xlu1 %3463, %v2915_v33  }
 0x84d   :  { %v3630_v9 = vpop.permute.xlu0 %3629 }
 0x84e   :  { %v3632_v31 = vunpack.i.h.bf16 %v3630_v9  ;;  %v3631_v18 = vunpack.i.l.bf16 %v3630_v9 }
 0x850   :  { %v2378_v51 = vsel %vm825_vm3, %v4704_v15, %v3631_v18  ;;  %v2379_v38 = vsel %vm825_vm3, %v4706_v35, %v3632_v31  ;;  %v3645_v15 = vld [vmem:[%s5414_s5 + $0x8] sm:$0xff]   ;;  %v3646_v35 = vld [vmem:[%s5416_s7] sm:$0xff]  }
 0x851   :  { %v2382_v20 = vpack.c.bf16 %v2379_v38, %v2378_v51  ;;  %3411 = vmatprep.mubr.msk.bf16.mxu1 %vm251_vm0, %v3646_v35 }
 0x853   :  { %3399 = vmatprep.subr.bf16.mxu0 %v2382_v20 }
 0x854   :  { %3400 = vmatpush3.bf16.msra.mxu0 %v2382_v20 }
 0x86d   :  { %v3635_v61 = vpop.permute.xlu1 %3634 }
 0x86e   :  { %v3637_v26 = vunpack.i.h.bf16 %v3635_v61  ;;  %v3636_v57 = vunpack.i.l.bf16 %v3635_v61 }
 0x870   :  { %v2380_v60 = vsel %vm825_vm3, %v4708_v23, %v3636_v57  ;;  %v2381_v32 = vsel %vm825_vm3, %v4722_v3, %v3637_v26  ;;  %v2395_v23 = vpop.permute.xlu0 %2394 }
 0x871   :  { %v2383_v47 = vpack.c.bf16 %v2381_v32, %v2380_v60 }
 0x873   :  { %3401 = vmatprep.subr.bf16.mxu0 %v2383_v47 }
 0x874   :  { %3402 = vmatpush3.bf16.msra.mxu0 %v2383_v47  ;;  %v2405_v0 = vpop.permute.xlu0 %2404 }
 0x877   :  { %3404 = vmatmul.mubr.msk.bf16.vlgmr.msra.gmra.mrb[52].mxu0 %vm251_vm0, %v3645_v15 }
 0x878   :  { %3443 = vmatprep.mubr.bf16.mxu0 %v3654_v62  ;;  %v2518_v43 = vpop.permute.xlu0 %2517 }
 0x87c   :  { %v2528_v58 = vpop.permute.xlu0 %2527 }
 0x87e   :  { %v2400_v49 = vpop.permute.xlu1 %2399 }
 0x880   :  { %v2538_v44 = vpop.permute.xlu0 %2537 }
 0x882   :  { %v2410_v3 = vpop.permute.xlu1 %2409 }
 0x884   :  { %v2548_v40 = vpop.permute.xlu0 %2547 }
 0x886   :  { %v2523_v36 = vpop.permute.xlu1 %2522 }
 0x888   :  { %v2558_v9 = vpop.permute.xlu0 %2557 }
 0x88a   :  { %v2533_v2 = vpop.permute.xlu1 %2532 }
 0x88e   :  { %v2543_v10 = vpop.permute.xlu1 %2542 }
 0x892   :  { %v2553_v48 = vpop.permute.xlu1 %2552 }
 0x896   :  { %v2563_v20 = vpop.permute.xlu1 %2562 }
 0x94a   :  { %v3405_v4 = vpop.f32.mrb[52].mxu0 }
 0x94b   :  { %v2462_v63 = vpop.f32.mrb[53].mxu0  ;;  %v2471_v46 = vadd.f32 %v3405_v4, %v2405_v0 }
 0x94c   :  { %v2463_v11 = vadd.f32 %v2462_v63, %v2395_v23  ;;  %v3406_v22 = vpop.f32.mrb[54].mxu0 }
 0x94d   :  { %v2474_v16 = vadd.f32 %v3406_v22, %v2410_v3  ;;  %v2465_v19 = vpop.f32.mrb[55].mxu0  ;;  %v5241_v13 = vadd.f32 %v3949_v6, %v2471_v46 }
 0x94e   :  { %v2466_v30 = vadd.f32 %v2465_v19, %v2400_v49  ;;  %v5226_v24 = vadd.f32 %v3946_v56, %v2463_v11 }
 0x94f   :  { %v5231_v54 = vadd.f32 %v3947_v55, %v2474_v16  ;;  %v2568_v16 = vpop.permute.xlu0 %2567 }
 0x950   :  { %v5236_v8 = vadd.f32 %v3948_v25, %v2466_v30 }
 0x951   :  { %v2498_v59 = vpack.c.bf16 %v5231_v54, %v5241_v13 }
 0x952   :  { %v2497_v34 = vpack.c.bf16 %v5236_v8, %v5226_v24 }
 0x954   :  { %3407 = vmatprep.subr.bf16.mxu1 %v2497_v34 }
 0x955   :  { %3408 = vmatpush3.bf16.msra.mxu1 %v2497_v34  ;;  %v2573_v34 = vpop.permute.xlu1 %2572 }
 0x956   :  { %3409 = vmatprep.subr.bf16.mxu1 %v2498_v59 }
 0x959   :  { %3410 = vmatpush3.bf16.msra.mxu1 %v2498_v59 }
 0x95c   :  { %3412 = vmatmul.mubr.msk.bf16.vlgmr.msra.gmra.mrb[56].mxu1 %vm251_vm0, %v3647_v21 }
 0x95d   :  { %3415 = vmatprep.mubr.msk.bf16.mxu1 %vm251_vm0, %v3648_v42 }
 0x964   :  { %3416 = vmatmul.mubr.msk.bf16.gmra.mrb[60].mxu1 %vm251_vm0, %v3649_v52 }
 0x965   :  { %3419 = vmatprep.mubr.msk.bf16.mxu1 %vm251_vm0, %v3650_v12 }
 0x96c   :  { %3420 = vmatmul.mubr.msk.bf16.gmra.mrb[64].mxu1 %vm251_vm0, %v3651_v27 }
 0x96d   :  { %3423 = vmatprep.mubr.msk.bf16.mxu1 %vm251_vm0, %v3652_v53 }
 0x974   :  { %3424 = vmatmul.mubr.msk.bf16.gmra.mrb[68].mxu1 %vm251_vm0, %v3653_v29 }
 0xa2f   :  { %v3413_v28 = vpop.f32.mrb[56].mxu1 }
 0xa30   :  { %v5278_v39 = vadd.f32 %v3413_v28, %v2528_v58  ;;  %v2693_v7 = vpop.f32.mrb[57].mxu1 }
 0xa31   :  { %v5280_v14 = vadd.f32 %v2693_v7, %v2518_v43  ;;  %v3414_v17 = vpop.f32.mrb[58].mxu1 }
 0xa32   :  { %v2758_v45 = vmul.f32 %v5278_v39, %v5278_v39  ;;  %v5284_v37 = vadd.f32 %v3414_v17, %v2533_v2  ;;  %v2696_v41 = vpop.f32.mrb[59].mxu1  ;;  %v2578_v2 = vpop.permute.xlu0 %2577 }
 0xa33   :  { %v2756_v5 = vmul.f32 %v5280_v14, %v5280_v14  ;;  %v5288_v1 = vadd.f32 %v2696_v41, %v2523_v36 }
 0xa34   :  { %v2774_v50 = vmul.f32 %v2758_v45, %v5278_v39  ;;  %v2759_v33 = vmul.f32 %v5284_v37, %v5284_v37 }
 0xa35   :  { %v2772_v31 = vmul.f32 %v2756_v5, %v5280_v14  ;;  %v2757_v18 = vmul.f32 %v5288_v1, %v5288_v1  ;;  %v2583_v5 = vpop.permute.xlu1 %2582 }
 0xa36   :  { %v2790_v51 = vmul.f32 0.044715, %v2774_v50  ;;  %v2775_v38 = vmul.f32 %v2759_v33, %v5284_v37 }
 0xa37   :  { %v2788_v61 = vmul.f32 0.044715, %v2772_v31  ;;  %v2773_v26 = vmul.f32 %v2757_v18, %v5288_v1  ;;  %v3417_v57 = vpop.f32.mrb[60].mxu1 }
 0xa38   :  { %v2806_v60 = vadd.f32 %v2790_v51, %v5278_v39  ;;  %v2791_v32 = vmul.f32 0.044715, %v2775_v38  ;;  %v5299_v47 = vadd.f32 %v3417_v57, %v2548_v40  ;;  %v2709_v15 = vpop.f32.mrb[61].mxu1 }
 0xa39   :  { %v2804_v35 = vadd.f32 %v2788_v61, %v5280_v14  ;;  %v2789_v49 = vmul.f32 0.044715, %v2773_v26  ;;  %v5302_v23 = vadd.f32 %v2709_v15, %v2538_v44  ;;  %v3418_v4 = vpop.f32.mrb[62].mxu1 }
 0xa3a   :  { %v2822_v63 = vmul.f32 0.7978846, %v2806_v60  ;;  %v2807_v3 = vadd.f32 %v2791_v32, %v5284_v37  ;;  %v2762_v11 = vmul.f32 %v5299_v47, %v5299_v47  ;;  %v5307_v22 = vadd.f32 %v3418_v4, %v2553_v48  ;;  %v2712_v0 = vpop.f32.mrb[63].mxu1 }
 0xa3b   :  { %v2820_v19 = vmul.f32 0.7978846, %v2804_v35  ;;  %v2805_v46 = vadd.f32 %v2789_v49, %v5288_v1  ;;  %v2760_v30 = vmul.f32 %v5302_v23, %v5302_v23  ;;  %v5312_v56 = vadd.f32 %v2712_v0, %v2543_v10  ;;  %v2588_v35 = vpop.permute.xlu0 %2587 }
 0xa3c   :  { %3914 = vtanh.f32 %v2822_v63  ;;  %v2823_v55 = vmul.f32 0.7978846, %v2807_v3  ;;  %v2778_v25 = vmul.f32 %v2762_v11, %v5299_v47  ;;  %v2763_v6 = vmul.f32 %v5307_v22, %v5307_v22 }
 0xa3d   :  { %3916 = vtanh.f32 %v2820_v19  ;;  %v2821_v59 = vmul.f32 0.7978846, %v2805_v46  ;;  %v2776_v21 = vmul.f32 %v2760_v30, %v5302_v23  ;;  %v2761_v42 = vmul.f32 %v5312_v56, %v5312_v56 }
 0xa3e   :  { %3918 = vtanh.f32 %v2823_v55  ;;  %v2794_v52 = vmul.f32 0.044715, %v2778_v25  ;;  %v2779_v12 = vmul.f32 %v2763_v6, %v5307_v22  ;;  %v2593_v55 = vpop.permute.xlu1 %2592 }
 0xa3f   :  { %v2792_v27 = vmul.f32 0.044715, %v2776_v21  ;;  %v2777_v53 = vmul.f32 %v2761_v42, %v5312_v56  ;;  %v3421_v29 = vpop.f32.mrb[64].mxu1  ;;  %3920 = vtanh.f32 %v2821_v59 }
 0xa40   :  { %v2810_v62 = vadd.f32 %v2794_v52, %v5299_v47  ;;  %v2795_v43 = vmul.f32 0.044715, %v2779_v12  ;;  %v5323_v36 = vadd.f32 %v3421_v29, %v2568_v16  ;;  %v2725_v58 = vpop.f32.mrb[65].mxu1 }
 0xa41   :  { %v2808_v44 = vadd.f32 %v2792_v27, %v5302_v23  ;;  %v2793_v10 = vmul.f32 0.044715, %v2777_v53  ;;  %v5326_v40 = vadd.f32 %v2725_v58, %v2558_v9  ;;  %v3422_v28 = vpop.f32.mrb[66].mxu1 }
 0xa42   :  { %v2826_v7 = vmul.f32 0.7978846, %v2810_v62  ;;  %v2811_v48 = vadd.f32 %v2795_v43, %v5307_v22  ;;  %v2766_v17 = vmul.f32 %v5323_v36, %v5323_v36  ;;  %v5331_v45 = vadd.f32 %v3422_v28, %v2573_v34  ;;  %v2728_v41 = vpop.f32.mrb[67].mxu1 }
 0xa43   :  { %v2824_v50 = vmul.f32 0.7978846, %v2808_v44  ;;  %v2809_v33 = vadd.f32 %v2793_v10, %v5312_v56  ;;  %v2764_v31 = vmul.f32 %v5326_v40, %v5326_v40  ;;  %v5336_v18 = vadd.f32 %v2728_v41, %v2563_v20 }
 0xa44   :  { %3922 = vtanh.f32 %v2826_v7  ;;  %v2827_v9 = vmul.f32 0.7978846, %v2811_v48  ;;  %v2782_v51 = vmul.f32 %v2766_v17, %v5323_v36  ;;  %v2767_v38 = vmul.f32 %v5331_v45, %v5331_v45 }
 0xa45   :  { %3924 = vtanh.f32 %v2824_v50  ;;  %v2825_v61 = vmul.f32 0.7978846, %v2809_v33  ;;  %v2780_v26 = vmul.f32 %v2764_v31, %v5326_v40  ;;  %v2765_v57 = vmul.f32 %v5336_v18, %v5336_v18 }
 0xa46   :  { %v3915_v60 = vpop.eup %3914  ;;  %3926 = vtanh.f32 %v2827_v9  ;;  %v2798_v32 = vmul.f32 0.044715, %v2782_v51  ;;  %v2783_v20 = vmul.f32 %v2767_v38, %v5331_v45 }
 0xa47   :  { %v3917_v15 = vpop.eup %3916  ;;  %3928 = vtanh.f32 %v2825_v61  ;;  %v2796_v49 = vmul.f32 0.044715, %v2780_v26  ;;  %v2781_v4 = vmul.f32 %v2765_v57, %v5336_v18  ;;  %v3425_v63 = vpop.f32.mrb[68].mxu1  ;;  %v2854_v3 = vadd.f32 1.0, %v3915_v60 }
 0xa48   :  { %v3919_v11 = vpop.eup %3918  ;;  %v2814_v0 = vadd.f32 %v2798_v32, %v5323_v36  ;;  %v2799_v16 = vmul.f32 0.044715, %v2783_v20  ;;  %v5347_v19 = vadd.f32 %v3425_v63, %v2588_v35  ;;  %v2741_v46 = vpop.f32.mrb[69].mxu1  ;;  %v2852_v30 = vadd.f32 1.0, %v3917_v15 }
 0xa49   :  { %v2812_v25 = vadd.f32 %v2796_v49, %v5326_v40  ;;  %v2797_v6 = vmul.f32 0.044715, %v2781_v4  ;;  %v5350_v34 = vadd.f32 %v2741_v46, %v2578_v2  ;;  %v3426_v59 = vpop.f32.mrb[70].mxu1  ;;  %v2855_v21 = vadd.f32 1.0, %v3919_v11  ;;  %v3921_v29 = vpop.eup %3920 }
 0xa4a   :  { %v2830_v42 = vmul.f32 0.7978846, %v2814_v0  ;;  %v2815_v52 = vadd.f32 %v2799_v16, %v5331_v45  ;;  %v2770_v12 = vmul.f32 %v5347_v19, %v5347_v19  ;;  %v5355_v27 = vadd.f32 %v3426_v59, %v2593_v55  ;;  %v2744_v53 = vpop.f32.mrb[71].mxu1 }
 0xa4b   :  { %v2828_v62 = vmul.f32 0.7978846, %v2812_v25  ;;  %v2813_v43 = vadd.f32 %v2797_v6, %v5336_v18  ;;  %v2768_v58 = vmul.f32 %v5350_v34, %v5350_v34  ;;  %v5360_v2 = vadd.f32 %v2744_v53, %v2583_v5 }
 0xa4c   :  { %3930 = vtanh.f32 %v2830_v42  ;;  %v2831_v44 = vmul.f32 0.7978846, %v2815_v52  ;;  %v2786_v10 = vmul.f32 %v2770_v12, %v5347_v19  ;;  %v2771_v28 = vmul.f32 %v5355_v27, %v5355_v27 }
 0xa4d   :  { %3932 = vtanh.f32 %v2828_v62  ;;  %v2829_v7 = vmul.f32 0.7978846, %v2813_v43  ;;  %v2784_v48 = vmul.f32 %v2768_v58, %v5350_v34  ;;  %v2769_v17 = vmul.f32 %v5360_v2, %v5360_v2 }
 0xa4e   :  { %v3923_v41 = vpop.eup %3922  ;;  %3934 = vtanh.f32 %v2831_v44  ;;  %v2802_v50 = vmul.f32 0.044715, %v2786_v10  ;;  %v2787_v5 = vmul.f32 %v2771_v28, %v5355_v27  ;;  %v2853_v33 = vadd.f32 1.0, %v3921_v29 }
 0xa4f   :  { %v3925_v31 = vpop.eup %3924  ;;  %3936 = vtanh.f32 %v2829_v7  ;;  %v2800_v9 = vmul.f32 0.044715, %v2784_v48  ;;  %v2785_v51 = vmul.f32 %v2769_v17, %v5360_v2  ;;  %v2868_v38 = vmul.f32 0.5, %v2852_v30 }
 0xa50   :  { %v3927_v61 = vpop.eup %3926  ;;  %v2818_v26 = vadd.f32 %v2802_v50, %v5347_v19  ;;  %v2803_v57 = vmul.f32 0.044715, %v2787_v5  ;;  %v2869_v60 = vmul.f32 0.5, %v2853_v33  ;;  %v2870_v32 = vmul.f32 0.5, %v2854_v3 }
 0xa51   :  { %v3929_v20 = vpop.eup %3928  ;;  %v2816_v15 = vadd.f32 %v2800_v9, %v5350_v34  ;;  %v2801_v35 = vmul.f32 0.044715, %v2785_v51  ;;  %v2884_v49 = vmul.f32 %v2868_v38, %v5280_v14  ;;  %v2871_v4 = vmul.f32 0.5, %v2855_v21 }
 0xa52   :  { %v2834_v63 = vmul.f32 0.7978846, %v2818_v26  ;;  %v2819_v11 = vadd.f32 %v2803_v57, %v5355_v27  ;;  %v2885_v0 = vmul.f32 %v2869_v60, %v5288_v1  ;;  %v2886_v16 = vmul.f32 %v2870_v32, %v5278_v39 }
 0xa53   :  { %v2832_v46 = vmul.f32 0.7978846, %v2816_v15  ;;  %v2817_v30 = vadd.f32 %v2801_v35, %v5360_v2  ;;  %v2887_v55 = vmul.f32 %v2871_v4, %v5284_v37  ;;  %v2856_v3 = vadd.f32 1.0, %v3925_v31 }
 0xa54   :  { %3938 = vtanh.f32 %v2834_v63  ;;  %v2835_v25 = vmul.f32 0.7978846, %v2819_v11  ;;  %v2904_v6 = vpack.c.bf16 %v2885_v0, %v2884_v49  ;;  %v2857_v59 = vadd.f32 1.0, %v3929_v20 }
 0xa55   :  { %3940 = vtanh.f32 %v2832_v46  ;;  %v2833_v14 = vmul.f32 0.7978846, %v2817_v30  ;;  %v2905_v21 = vpack.c.bf16 %v2887_v55, %v2886_v16  ;;  %v2872_v42 = vmul.f32 0.5, %v2856_v3  ;;  %v3655_v30 = vld [vmem:[%s5418_s9 + $0x8] sm:$0xff]   ;;  %s3950_s9 = scalar_lea.vmem %s3011_s13, 512 }
 0xa56   :  { %v3931_v52 = vpop.eup %3930  ;;  %3942 = vtanh.f32 %v2835_v25  ;;  %3427 = vmatprep.subr.bf16.mxu0 %v2904_v6  ;;  %v2873_v1 = vmul.f32 0.5, %v2857_v59  ;;  %v2858_v12 = vadd.f32 1.0, %v3923_v41  ;;  %v2859_v39 = vadd.f32 1.0, %v3927_v61  ;;  %p3951_p0 = scmp.ne.s32.totalorder %s3011_s13, %s3950_s9  ;;  %p3956_p2 = scmp.lt.s32.totalorder %s3950_s9, %s3950_s9 }
 0xa57   :  { %v3933_v53 = vpop.eup %3932  ;;  %3944 = vtanh.f32 %v2833_v14  ;;  %3428 = vmatpush3.bf16.msra.mxu0 %v2904_v6  ;;  %v2888_v37 = vmul.f32 %v2872_v42, %v5302_v23  ;;  %v2862_v29 = vadd.f32 1.0, %v3931_v52 }
 0xa58   :  { %v3935_v62 = vpop.eup %3934  ;;  %3429 = vmatprep.subr.bf16.mxu0 %v2905_v21  ;;  %v2889_v43 = vmul.f32 %v2873_v1, %v5312_v56  ;;  %v2874_v58 = vmul.f32 0.5, %v2858_v12  ;;  %v2875_v44 = vmul.f32 0.5, %v2859_v39  ;;  %v2860_v10 = vadd.f32 1.0, %v3933_v53  ;;  %p3957_p3 = por %p3956_p2, %p3955_p1 }
 0xa59   :  { %v3937_v28 = vpop.eup %3936  ;;  %v2863_v7 = vadd.f32 1.0, %v3935_v62  ;;  %v2878_v48 = vmul.f32 0.5, %v2862_v29 }
 0xa5a   :  { %v2906_v17 = vpack.c.bf16 %v2889_v43, %v2888_v37  ;;  %v2890_v41 = vmul.f32 %v2874_v58, %v5299_v47  ;;  %v2891_v50 = vmul.f32 %v2875_v44, %v5307_v22  ;;  %v2861_v5 = vadd.f32 1.0, %v3937_v28  ;;  %p3958_p4 = pnand %p3957_p3, %p3951_p0 }
 0xa5b   :  { %3430 = vmatpush3.bf16.msra.mxu0 %v2905_v21  ;;  %v2876_v33 = vmul.f32 0.5, %v2860_v10  ;;  %v2879_v23 = vmul.f32 0.5, %v2863_v7  ;;  %v2894_v56 = vmul.f32 %v2878_v48, %v5323_v36 }
 0xa5c   :  { %3431 = vmatprep.subr.bf16.mxu0 %v2906_v17  ;;  %v2907_v31 = vpack.c.bf16 %v2891_v50, %v2890_v41  ;;  %v2877_v9 = vmul.f32 0.5, %v2861_v5 }
 0xa5d   :  { %v2895_v51 = vmul.f32 %v2879_v23, %v5331_v45  ;;  %v2892_v61 = vmul.f32 %v2876_v33, %v5326_v40 }
 0xa5e   :  { %v3939_v38 = vpop.eup %3938  ;;  %v2893_v26 = vmul.f32 %v2877_v9, %v5336_v18 }
 0xa5f   :  { %v3941_v57 = vpop.eup %3940  ;;  %3432 = vmatpush3.bf16.msra.mxu0 %v2906_v17  ;;  %v2909_v47 = vpack.c.bf16 %v2895_v51, %v2894_v56  ;;  %v2866_v22 = vadd.f32 1.0, %v3939_v38 }
 0xa60   :  { %v3943_v60 = vpop.eup %3942  ;;  %3433 = vmatprep.subr.bf16.mxu0 %v2907_v31  ;;  %v2908_v32 = vpack.c.bf16 %v2893_v26, %v2892_v61  ;;  %v2864_v20 = vadd.f32 1.0, %v3941_v57 }
 0xa61   :  { %v3945_v15 = vpop.eup %3944  ;;  %v2867_v35 = vadd.f32 1.0, %v3943_v60  ;;  %v2882_v49 = vmul.f32 0.5, %v2866_v22 }
 0xa62   :  { %v2865_v4 = vadd.f32 1.0, %v3945_v15  ;;  %v2880_v36 = vmul.f32 0.5, %v2864_v20 }
 0xa63   :  { %3434 = vmatpush3.bf16.msra.mxu0 %v2907_v31  ;;  %v2883_v45 = vmul.f32 0.5, %v2867_v35  ;;  %v2898_v40 = vmul.f32 %v2882_v49, %v5347_v19  ;;  %v2919_v19 = vpop.permute.xlu0 %2918 }
 0xa64   :  { %3435 = vmatprep.subr.bf16.mxu0 %v2908_v32  ;;  %v2881_v63 = vmul.f32 0.5, %v2865_v4  ;;  %v2896_v11 = vmul.f32 %v2880_v36, %v5350_v34 }
 0xa65   :  { %v2899_v18 = vmul.f32 %v2883_v45, %v5355_v27  ;;  %v2924_v27 = vpop.permute.xlu1 %2923 }
 0xa66   :  { %v2897_v0 = vmul.f32 %v2881_v63, %v5360_v2 }
 0xa67   :  { %3436 = vmatpush3.bf16.msra.mxu0 %v2908_v32  ;;  %v2911_v16 = vpack.c.bf16 %v2899_v18, %v2898_v40  ;;  %v2929_v55 = vpop.permute.xlu0 %2928 }
 0xa68   :  { %3437 = vmatprep.subr.bf16.mxu0 %v2909_v47  ;;  %v2910_v46 = vpack.c.bf16 %v2897_v0, %v2896_v11 }
 0xa69   :  { %v2934_v25 = vpop.permute.xlu1 %2933 }
 0xa6b   :  { %3438 = vmatpush3.bf16.msra.mxu0 %v2909_v47 }
 0xa6c   :  { %3439 = vmatprep.subr.bf16.mxu0 %v2910_v46 }
 0xa6f   :  { %3440 = vmatpush3.bf16.msra.mxu0 %v2910_v46 }
 0xa70   :  { %3441 = vmatprep.subr.bf16.mxu0 %v2911_v16 }
 0xa73   :  { %3442 = vmatpush3.bf16.msra.mxu0 %v2911_v16 }
 0xa76   :  { %3444 = vmatmul.mubr.bf16.vlgmr.msra.gmra.mrb[56].mxu0 %v3655_v30 }
 0xb49   :  { %v3445_v34 = vpop.f32.mrb[56].mxu0 }
 0xb4a   :  { %v2991_v3 = vadd.f32 %v3445_v34, %v2929_v55  ;;  %v2982_v2 = vpop.f32.mrb[57].mxu0 }
 0xb4b   :  { %v2983_v6 = vadd.f32 %v2982_v2, %v2919_v19  ;;  %v3446_v59 = vpop.f32.mrb[58].mxu0 }
 0xb4c   :  { %v2999_v14 = vadd.f32 %v2991_v3, %v5241_v13  ;;  %v2994_v21 = vadd.f32 %v3446_v59, %v2934_v25  ;;  %v2985_v42 = vpop.f32.mrb[59].mxu0 }
 0xb4d   :  { %v2997_v52 = vadd.f32 %v2983_v6, %v5226_v24  ;;  %v2986_v1 = vadd.f32 %v2985_v42, %v2924_v27 }
 0xb4e   :  { %3003 = vst [vmem:[#allocation2 + $0x10] sm:$0xff] %v2999_v14  ;;  %v3000_v12 = vadd.f32 %v2994_v21, %v5231_v54 }
 0xb4f   :  { %3001 = vst [vmem:[#allocation2] sm:$0xff] %v2997_v52  ;;  %v2998_v39 = vadd.f32 %v2986_v1, %v5236_v8 }
 0xb50   :  { %3004 = vst [vmem:[#allocation2 + $0x18] sm:$0xff] %v3000_v12 }
 0xb51   :  { %3002 = vst [vmem:[#allocation2 + $0x8] sm:$0xff] %v2998_v39 }
 0xb52   :  { %3961 = shalt.err (!%p3958_p4)
}
 0xb53   :  { %s3962_s19 = scalar_lea.hbm %s5420_s11, 512 }
 0xb54   :  { %p3963_p5 = scmp.ne.s32.totalorder %s5420_s11, %s3962_s19  ;;  %p3966_p6 = scmp.lt.u32.totalorder %s3962_s19, %s5420_s11 }
 0xb56   :  { %p3968_p7 = pnand %p3966_p6, %p3963_p5 }
 0xb58   :  { %3971 = shalt.err (!%p3968_p7)
}
 0xb59   :  { %s3979_s23 = smov 128   ;;  %s3980_s6 = smov 8  }
 0xb5a   :  { %3016 = dma.vmem_to_hbm [thread:$0]  %s3011_s13, 512, %s5420_s11, [#allocation3], %s3979_s23, %s3979_s23, %s3980_s6  }
 0xb5b   :  { %3972 = dma.done.wait [#allocation3], 512  }
 0xb5c   :  { %3973 = vsyncadd [#allocation3], 4294966784 }
 0xb5d   :  { %3020 = vsyncpa [#allocation3], 1 }

</bundles_post_ra>
